<compile_context>
chip_gen: v5e
topology: v5e:2x2
jax: 0.10.0
libtpu: 0.0.40
codegen_flags: <defaults>
</compile_context>

<pallas_src>
import functools

import jax
import jax.numpy as jnp
from jax.experimental import pallas as pl
from jax.experimental.pallas import tpu as pltpu


_FLOW_PAD = 128   # lane-dense padded flow-head output width (2 valid channels)


# --------------------------------------------------------------------------
# Fused kernel: embeds + tiled cost volume + transformer layer + flow head
# --------------------------------------------------------------------------
def _protoformer_kernel(
    p1_ref, p2_ref,
    feat_w_ref, feat_b_ref, ctx_w_ref, ctx_b_ref,
    cost_w_ref, cost_b_ref,
    wq_ref, wkv_ref, wo_ref,
    g1_ref, be1_ref, w1_ref, b1_ref, w2_ref, b2_ref, g2_ref, be2_ref,
    fw_mem_ref, fw_ctx_ref, fb_ref,
    o_ref,
    mem_scr, kT_scr, v_scr,
    *, n_tok, d_mem, tq, tr,
):
    qt = pl.program_id(1)
    nrm = jnp.bfloat16(2.0 / 255.0)
    one = jnp.bfloat16(1.0)

    # ---------------- per-batch precompute (first query tile only) ----------
    # Feature embeds, cost volume in TR-row tiles (full (N,N) never lives in
    # VMEM), latent cost-memory projection, fused K|V projection -> scratch.
    @pl.when(qt == 0)
    def _precompute():
        x1 = p1_ref[...] * nrm - one                                  # (N,K) bf16
        x2 = p2_ref[...] * nrm - one
        # D^-0.25 is pre-folded into feat_w / feat_b, so cost carries 1/sqrt(D)
        f1 = (jnp.dot(x1, feat_w_ref[...],
                      preferred_element_type=jnp.float32)
              + feat_b_ref[...]).astype(jnp.bfloat16)                 # (N,D)
        f2 = (jnp.dot(x2, feat_w_ref[...],
                      preferred_element_type=jnp.float32)
              + feat_b_ref[...]).astype(jnp.bfloat16)                 # (N,D)
        f2t = f2.T                                                    # hoisted

        # cost rows are tiled; cost_w always sees the full column range, so
        # the (N, Dm) projection weight indexing stays consistent under tiling
        for r in range(n_tok // tr):
            f1_r = f1[r * tr:(r + 1) * tr, :]                         # (TR,D)
            cost_r = jnp.dot(f1_r, f2t,
                             preferred_element_type=jnp.float32)      # (TR,N)
            mem_r = jnp.dot(cost_r.astype(jnp.bfloat16), cost_w_ref[...],
                            preferred_element_type=jnp.float32) + cost_b_ref[...]
            mem_scr[pl.ds(r * tr, tr), :] = mem_r                     # (TR,Dm)

        # fused K|V projection of the cost-memory tokens (one MXU pass)
        kv = jnp.dot(mem_scr[...].astype(jnp.bfloat16), wkv_ref[...],
                     preferred_element_type=jnp.float32)              # (N,2Dm)
        kT_scr[...] = kv[:, :d_mem].astype(jnp.bfloat16).T            # (Dm,N)
        v_scr[...] = kv[:, d_mem:].astype(jnp.bfloat16)               # (N,Dm)

    # ---------------- per-query-tile transformer layer + flow head ----------
    row0 = pl.multiple_of(qt * tq, tq)
    mem_q = mem_scr[pl.ds(row0, tq), :]                               # (TQ,Dm) f32
    xb = mem_q.astype(jnp.bfloat16)

    # attention; 1/sqrt(Dm) is pre-folded into wq
    q = jnp.dot(xb, wq_ref[...], preferred_element_type=jnp.float32)
    s = jnp.dot(q.astype(jnp.bfloat16), kT_scr[...],
                preferred_element_type=jnp.float32)                   # (TQ,N)
    m = jnp.max(s, axis=-1, keepdims=True)
    p = jnp.exp((s - m).astype(jnp.bfloat16))                         # bf16 EUP exp
    l = jnp.sum(p, axis=-1, keepdims=True, dtype=jnp.float32)
    inv_l = pl.reciprocal(l, approx=True)
    # deferred softmax normalization: scale after the PV matmul
    attn = jnp.dot(p, v_scr[...], preferred_element_type=jnp.float32) * inv_l

    x = mem_q + jnp.dot(attn.astype(jnp.bfloat16), wo_ref[...],
                        preferred_element_type=jnp.float32)

    # LayerNorm 1 (single pass: var = E[x^2] - mu^2)
    mu = jnp.mean(x, axis=-1, keepdims=True)
    ms = jnp.mean(x * x, axis=-1, keepdims=True)
    x = (x - mu) * jax.lax.rsqrt(ms - mu * mu + 1e-6) * g1_ref[...] + be1_ref[...]

    # MLP
    h = jnp.dot(x.astype(jnp.bfloat16), w1_ref[...],
                preferred_element_type=jnp.float32) + b1_ref[...]
    h = jax.nn.gelu(h, approximate=True)
    x = x + jnp.dot(h.astype(jnp.bfloat16), w2_ref[...],
                    preferred_element_type=jnp.float32) + b2_ref[...]

    # LayerNorm 2 (single pass)
    mu = jnp.mean(x, axis=-1, keepdims=True)
    ms = jnp.mean(x * x, axis=-1, keepdims=True)
    cost_mem = (x - mu) * jax.lax.rsqrt(ms - mu * mu + 1e-6) * g2_ref[...] + be2_ref[...]

    # context encoder output for this tile, computed LATE (short live range)
    x1_q = p1_ref[pl.ds(row0, tq), :] * nrm - one                     # (TQ,K) bf16
    ctx_q = jnp.dot(x1_q, ctx_w_ref[...],
                    preferred_element_type=jnp.float32) + ctx_b_ref[...]

    # flow head: no concatenate; two dots into one accumulator; bf16 store
    out = (jnp.dot(cost_mem.astype(jnp.bfloat16), fw_mem_ref[...],
                   preferred_element_type=jnp.float32)
           + jnp.dot(ctx_q.astype(jnp.bfloat16), fw_ctx_ref[...],
                     preferred_element_type=jnp.float32)
           + fb_ref[...])
    o_ref[...] = out.astype(o_ref.dtype)                              # (TQ,128) bf16


# --------------------------------------------------------------------------
# pallas_call wrapper
# --------------------------------------------------------------------------
def _forward_fused(p1, p2, params, *, tq, tr):
    B, N, K = p1.shape
    D = params["ctx_w"].shape[1]
    Dm = params["wq"].shape[1]
    Hm = params["w1"].shape[1]
    COUT = params["flow_w_mem"].shape[1]
    assert N % tq == 0 and N % tr == 0 and tq % 8 == 0 and tr % 8 == 0
    NQ = N // tq

    kern = functools.partial(_protoformer_kernel, n_tok=N, d_mem=Dm, tq=tq, tr=tr)

    def weight(shape):
        # constant operand: same block every grid step, single-buffered
        return pl.BlockSpec(shape, lambda b, q: (0,) * len(shape),
                            pipeline_mode=pl.Buffered(1))

    def per_batch(*dims):
        # per-batch slab, leading size-1 batch dim squeezed away
        return pl.BlockSpec((None,) + dims, lambda b, q: (b,) + (0,) * len(dims))

    return pl.pallas_call(
        kern,
        out_shape=jax.ShapeDtypeStruct((B, N, COUT), jnp.bfloat16),
        grid=(B, NQ),
        in_specs=[
            per_batch(N, K), per_batch(N, K),
            weight((K, D)), weight((1, D)),          # feat_w, feat_b
            weight((K, D)), weight((1, D)),          # ctx_w,  ctx_b
            weight((N, Dm)), weight((1, Dm)),        # cost_w, cost_b
            weight((Dm, Dm)), weight((Dm, 2 * Dm)), weight((Dm, Dm)),  # wq, wkv, wo
            weight((1, Dm)), weight((1, Dm)),        # ln1
            weight((Dm, Hm)), weight((1, Hm)),       # w1, b1
            weight((Hm, Dm)), weight((1, Dm)),       # w2, b2
            weight((1, Dm)), weight((1, Dm)),        # ln2
            weight((Dm, COUT)), weight((D, COUT)), weight((1, COUT)),  # flow head
        ],
        out_specs=pl.BlockSpec((None, tq, COUT), lambda b, q: (b, q, 0)),
        scratch_shapes=[
            pltpu.VMEM((N, Dm), jnp.float32),    # cost-memory tokens (all N)
            pltpu.VMEM((Dm, N), jnp.bfloat16),   # K^T
            pltpu.VMEM((N, Dm), jnp.bfloat16),   # V
        ],
        compiler_params=pltpu.CompilerParams(
            dimension_semantics=("parallel", "arbitrary"),
            vmem_limit_bytes=48 * 1024 * 1024,
        ),
    )(
        p1, p2,
        params["feat_w"], params["feat_b"],
        params["ctx_w"], params["ctx_b"],
        params["cost_w"], params["cost_b"],
        params["wq"], params["wkv"], params["wo"],
        params["ln1_g"], params["ln1_b"],
        params["w1"], params["b1"], params["w2"], params["b2"],
        params["ln2_g"], params["ln2_b"],
        params["flow_w_mem"], params["flow_w_ctx"], params["flow_b"],
    )


# --------------------------------------------------------------------------
# Model wrapper (glue in plain JAX)
# --------------------------------------------------------------------------
def _patchify(x_nchw, patch):
    # (B, C, H, W) -> (B, (H/P)*(W/P), P*P*C)
    B, C, H, W = x_nchw.shape
    Hp, Wp = H // patch, W // patch
    x = x_nchw.reshape(B, C, Hp, patch, Wp, patch)
    x = jnp.transpose(x, (0, 2, 4, 3, 5, 1))              # (B, Hp, Wp, P, P, C)
    return x.reshape(B, Hp * Wp, patch * patch * C)


class Protoformer:
    def __init__(self, cfg, key):
        self.cfg = cfg
        C, P = cfg["channels"], cfg["patch"]
        D, Dm, Hm = cfg["dim"], cfg["mem_dim"], cfg["mlp_dim"]
        N = (cfg["hw"] // P) ** 2
        K = P * P * C

        def dense(k, shape, scale=0.02):
            return scale * jax.random.normal(k, shape, jnp.float32)

        ks = jax.random.split(key, 16)

        # scale folds: D^-0.25 into feat (so f1.f2 carries 1/sqrt(D)),
        # 1/sqrt(Dm) into wq -> no in-kernel scale multiplies.
        feat_scale = float(D) ** -0.25
        q_scale = float(Dm) ** -0.5

        # flow head generated at true width (2), zero-padded to lane-dense 128
        flow_w_mem = jnp.zeros((Dm, _FLOW_PAD), jnp.float32).at[:, :2].set(
            dense(ks[9], (Dm, 2)))
        flow_w_ctx = jnp.zeros((D, _FLOW_PAD), jnp.float32).at[:, :2].set(
            dense(ks[10], (D, 2)))

        self.params = {
            # context encoder (BasicEncoder stand-in)
            "ctx_w": dense(ks[0], (K, D)).astype(jnp.bfloat16),
            "ctx_b": jnp.zeros((1, D), jnp.float32),
            # memory-encoder feature extractor (shared for image1/image2)
            "feat_w": (feat_scale * dense(ks[1], (K, D))).astype(jnp.bfloat16),
            "feat_b": jnp.zeros((1, D), jnp.float32),
            # cost-volume -> latent token projection
            "cost_w": dense(ks[2], (N, Dm)).astype(jnp.bfloat16),
            "cost_b": jnp.zeros((1, Dm), jnp.float32),
            # transformer encoder layer over cost memory
            "wq": (q_scale * dense(ks[3], (Dm, Dm))).astype(jnp.bfloat16),
            "wkv": jnp.concatenate(
                [dense(ks[4], (Dm, Dm)), dense(ks[5], (Dm, Dm))],
                axis=1).astype(jnp.bfloat16),
            "wo": dense(ks[6], (Dm, Dm)).astype(jnp.bfloat16),
            "ln1_g": jnp.ones((1, Dm), jnp.float32),
            "ln1_b": jnp.zeros((1, Dm), jnp.float32),
            "w1": dense(ks[7], (Dm, Hm)).astype(jnp.bfloat16),
            "b1": jnp.zeros((1, Hm), jnp.float32),
            "w2": dense(ks[8], (Hm, Dm)).astype(jnp.bfloat16),
            "b2": jnp.zeros((1, Dm), jnp.float32),
            "ln2_g": jnp.ones((1, Dm), jnp.float32),
            "ln2_b": jnp.zeros((1, Dm), jnp.float32),
            # flow head (padded, lane-dense)
            "flow_w_mem": flow_w_mem.astype(jnp.bfloat16),
            "flow_w_ctx": flow_w_ctx.astype(jnp.bfloat16),
            "flow_b": jnp.zeros((1, _FLOW_PAD), jnp.float32),
        }

    def forward(self, image1, image2, output=None, flow_init=None):
        cfg = self.cfg
        P = cfg["patch"]
        B, C, H, W = image1.shape
        Hp, Wp = H // P, W // P

        # TODO(synk): cfg.context_concat=True branch (channel concat of the two
        # images before the context encoder) not reproduced.
        p1 = _patchify(image1, P).astype(jnp.bfloat16)   # bf16 HBM slabs
        p2 = _patchify(image2, P).astype(jnp.bfloat16)

        if cfg["type"] == "flow":
            tok = _forward_fused(p1, p2, self.params,
                                 tq=cfg["q_tile"], tr=cfg["r_tile"])   # (B,N,128) bf16
            flow_tok = tok[:, :, :2].astype(jnp.float32)               # valid channels
            flow = flow_tok.reshape(B, Hp, Wp, 2).transpose(0, 3, 1, 2)  # (B,2,Hp,Wp)
            if flow_init is not None:
                flow = flow + flow_init
            flow_predictions, depth_predictions = [flow], None
        else:
            # TODO(synk): 'depth' / 'joint' decoder heads not reproduced.
            flow_predictions, depth_predictions = None, None
        return flow_predictions, depth_predictions


# --------------------------------------------------------------------------
if __name__ == "__main__":
    cfg = dict(
        cnet="basicencoder", context_concat=False, type="flow", pretrain=False,
        channels=3, hw=16, patch=2, dim=32, mem_dim=32, mlp_dim=64,
        q_tile=32, r_tile=32,   # N=64 -> 2 query tiles, 2 cost-row tiles
    )
    key = jax.random.PRNGKey(0)
    kp, k1, k2 = jax.random.split(key, 3)

    model = Protoformer(cfg, kp)
    image1 = jax.random.uniform(k1, (2, 3, 16, 16), jnp.float32, 0.0, 255.0)
    image2 = jax.random.uniform(k2, (2, 3, 16, 16), jnp.float32, 0.0, 255.0)

    flow_preds, depth_preds = model.forward(image1, image2)
    jax.block_until_ready(flow_preds[0])
    assert flow_preds[0].shape == (2, 2, 8, 8)
    assert depth_preds is None
    assert bool(jnp.all(jnp.isfinite(flow_preds[0])))
    print("KERNEL_OK")
</pallas_src>

<mosaic_0001>
module attributes {stable_mosaic.version = 11 : i64} {
  func.func @_protoformer_kernel(%arg0: i32, %arg1: i32, %arg2: memref<1x64x12xbf16, #tpu.memory_space<vmem>>, %arg3: memref<1x64x12xbf16, #tpu.memory_space<vmem>>, %arg4: memref<12x32xbf16, #tpu.memory_space<vmem>>, %arg5: memref<1x32xf32, #tpu.memory_space<vmem>>, %arg6: memref<12x32xbf16, #tpu.memory_space<vmem>>, %arg7: memref<1x32xf32, #tpu.memory_space<vmem>>, %arg8: memref<64x32xbf16, #tpu.memory_space<vmem>>, %arg9: memref<1x32xf32, #tpu.memory_space<vmem>>, %arg10: memref<32x32xbf16, #tpu.memory_space<vmem>>, %arg11: memref<32x64xbf16, #tpu.memory_space<vmem>>, %arg12: memref<32x32xbf16, #tpu.memory_space<vmem>>, %arg13: memref<1x32xf32, #tpu.memory_space<vmem>>, %arg14: memref<1x32xf32, #tpu.memory_space<vmem>>, %arg15: memref<32x64xbf16, #tpu.memory_space<vmem>>, %arg16: memref<1x64xf32, #tpu.memory_space<vmem>>, %arg17: memref<64x32xbf16, #tpu.memory_space<vmem>>, %arg18: memref<1x32xf32, #tpu.memory_space<vmem>>, %arg19: memref<1x32xf32, #tpu.memory_space<vmem>>, %arg20: memref<1x32xf32, #tpu.memory_space<vmem>>, %arg21: memref<32x128xbf16, #tpu.memory_space<vmem>>, %arg22: memref<32x128xbf16, #tpu.memory_space<vmem>>, %arg23: memref<1x128xf32, #tpu.memory_space<vmem>>, %arg24: memref<1x32x128xbf16, #tpu.memory_space<vmem>>, %arg25: memref<64x32xf32, #tpu.memory_space<vmem>>, %arg26: memref<32x64xbf16, #tpu.memory_space<vmem>>, %arg27: memref<64x32xbf16, #tpu.memory_space<vmem>>) attributes {dimension_semantics = [#tpu.dimension_semantics<parallel>, #tpu.dimension_semantics<arbitrary>], iteration_bounds = array<i64: 2, 2>, scalar_prefetch = 0 : i64, scratch_operands = 3 : i64, tpu.core_type = #tpu.core_type<tc>, window_params = [{transform_indices = @transform_0, window_bounds = array<i64: 1, 64, 12>}, {transform_indices = @transform_1, window_bounds = array<i64: 1, 64, 12>}, {pipeline_mode = #tpu.pipeline_mode<synchronous>, transform_indices = @transform_2, window_bounds = array<i64: 12, 32>}, {pipeline_mode = #tpu.pipeline_mode<synchronous>, transform_indices = @transform_3, window_bounds = array<i64: 1, 32>}, {pipeline_mode = #tpu.pipeline_mode<synchronous>, transform_indices = @transform_4, window_bounds = array<i64: 12, 32>}, {pipeline_mode = #tpu.pipeline_mode<synchronous>, transform_indices = @transform_5, window_bounds = array<i64: 1, 32>}, {pipeline_mode = #tpu.pipeline_mode<synchronous>, transform_indices = @transform_6, window_bounds = array<i64: 64, 32>}, {pipeline_mode = #tpu.pipeline_mode<synchronous>, transform_indices = @transform_7, window_bounds = array<i64: 1, 32>}, {pipeline_mode = #tpu.pipeline_mode<synchronous>, transform_indices = @transform_8, window_bounds = array<i64: 32, 32>}, {pipeline_mode = #tpu.pipeline_mode<synchronous>, transform_indices = @transform_9, window_bounds = array<i64: 32, 64>}, {pipeline_mode = #tpu.pipeline_mode<synchronous>, transform_indices = @transform_10, window_bounds = array<i64: 32, 32>}, {pipeline_mode = #tpu.pipeline_mode<synchronous>, transform_indices = @transform_11, window_bounds = array<i64: 1, 32>}, {pipeline_mode = #tpu.pipeline_mode<synchronous>, transform_indices = @transform_12, window_bounds = array<i64: 1, 32>}, {pipeline_mode = #tpu.pipeline_mode<synchronous>, transform_indices = @transform_13, window_bounds = array<i64: 32, 64>}, {pipeline_mode = #tpu.pipeline_mode<synchronous>, transform_indices = @transform_14, window_bounds = array<i64: 1, 64>}, {pipeline_mode = #tpu.pipeline_mode<synchronous>, transform_indices = @transform_15, window_bounds = array<i64: 64, 32>}, {pipeline_mode = #tpu.pipeline_mode<synchronous>, transform_indices = @transform_16, window_bounds = array<i64: 1, 32>}, {pipeline_mode = #tpu.pipeline_mode<synchronous>, transform_indices = @transform_17, window_bounds = array<i64: 1, 32>}, {pipeline_mode = #tpu.pipeline_mode<synchronous>, transform_indices = @transform_18, window_bounds = array<i64: 1, 32>}, {pipeline_mode = #tpu.pipeline_mode<synchronous>, transform_indices = @transform_19, window_bounds = array<i64: 32, 128>}, {pipeline_mode = #tpu.pipeline_mode<synchronous>, transform_indices = @transform_20, window_bounds = array<i64: 32, 128>}, {pipeline_mode = #tpu.pipeline_mode<synchronous>, transform_indices = @transform_21, window_bounds = array<i64: 1, 128>}, {transform_indices = @transform_22, window_bounds = array<i64: 1, 32, 128>}]} {
    %c0_i32 = arith.constant 0 : i32
    %0 = arith.cmpi eq, %arg1, %c0_i32 : i32
    %1 = arith.extui %0 : i1 to i32
    %cst = arith.constant 7.873530e-03 : bf16
    %cst_0 = arith.constant 1.000000e+00 : bf16
    %c0_i32_1 = arith.constant 0 : i32
    %2 = arith.cmpi ne, %1, %c0_i32_1 : i32
    scf.if %2 {
      %c0_68 = arith.constant 0 : index
      %c0_69 = arith.constant 0 : index
      %c0_70 = arith.constant 0 : index
      %131 = vector.load %arg2[%c0_68, %c0_69, %c0_70] : memref<1x64x12xbf16, #tpu.memory_space<vmem>>, vector<1x64x12xbf16>
      %132 = vector.shape_cast %131 : vector<1x64x12xbf16> to vector<64x12xbf16>
      %133 = vector.broadcast %cst : bf16 to vector<64x12xbf16>
      %134 = arith.mulf %132, %133 : vector<64x12xbf16>
      %135 = vector.broadcast %cst_0 : bf16 to vector<64x12xbf16>
      %136 = arith.subf %134, %135 : vector<64x12xbf16>
      %c0_71 = arith.constant 0 : index
      %c0_72 = arith.constant 0 : index
      %c0_73 = arith.constant 0 : index
      %137 = vector.load %arg3[%c0_71, %c0_72, %c0_73] : memref<1x64x12xbf16, #tpu.memory_space<vmem>>, vector<1x64x12xbf16>
      %138 = vector.shape_cast %137 : vector<1x64x12xbf16> to vector<64x12xbf16>
      %139 = vector.broadcast %cst : bf16 to vector<64x12xbf16>
      %140 = arith.mulf %138, %139 : vector<64x12xbf16>
      %141 = vector.broadcast %cst_0 : bf16 to vector<64x12xbf16>
      %142 = arith.subf %140, %141 : vector<64x12xbf16>
      %c0_74 = arith.constant 0 : index
      %c0_75 = arith.constant 0 : index
      %143 = vector.load %arg4[%c0_74, %c0_75] : memref<12x32xbf16, #tpu.memory_space<vmem>>, vector<12x32xbf16>
      %cst_76 = arith.constant dense<0.000000e+00> : vector<64x32xf32>
      %144 = tpu.matmul %136, %143, %cst_76 {dimension_numbers = #tpu.dot_dimension_numbers<[1], [0], [0], [1], [0, 0, 1, 1], [], []>} : vector<64x12xbf16>, vector<12x32xbf16>, vector<64x32xf32> -> vector<64x32xf32>
      %c0_77 = arith.constant 0 : index
      %c0_78 = arith.constant 0 : index
      %145 = vector.load %arg5[%c0_77, %c0_78] : memref<1x32xf32, #tpu.memory_space<vmem>>, vector<1x32xf32>
      %146 = vector.broadcast %145 : vector<1x32xf32> to vector<64x32xf32>
      %147 = arith.addf %144, %146 : vector<64x32xf32>
      %148 = arith.truncf %147 : vector<64x32xf32> to vector<64x32xbf16>
      %c0_79 = arith.constant 0 : index
      %c0_80 = arith.constant 0 : index
      %149 = vector.load %arg4[%c0_79, %c0_80] : memref<12x32xbf16, #tpu.memory_space<vmem>>, vector<12x32xbf16>
      %cst_81 = arith.constant dense<0.000000e+00> : vector<64x32xf32>
      %150 = tpu.matmul %142, %149, %cst_81 {dimension_numbers = #tpu.dot_dimension_numbers<[1], [0], [0], [1], [0, 0, 1, 1], [], []>} : vector<64x12xbf16>, vector<12x32xbf16>, vector<64x32xf32> -> vector<64x32xf32>
      %c0_82 = arith.constant 0 : index
      %c0_83 = arith.constant 0 : index
      %151 = vector.load %arg5[%c0_82, %c0_83] : memref<1x32xf32, #tpu.memory_space<vmem>>, vector<1x32xf32>
      %152 = vector.broadcast %151 : vector<1x32xf32> to vector<64x32xf32>
      %153 = arith.addf %150, %152 : vector<64x32xf32>
      %154 = arith.truncf %153 : vector<64x32xf32> to vector<64x32xbf16>
      %155 = tpu.transpose %154, [1, 0] : vector<64x32xbf16> -> vector<32x64xbf16>
      %156 = vector.extract_strided_slice %148 {offsets = [0, 0], sizes = [32, 32], strides = [1, 1]} : vector<64x32xbf16> to vector<32x32xbf16>
      %cst_84 = arith.constant dense<0.000000e+00> : vector<32x64xf32>
      %157 = tpu.matmul %156, %155, %cst_84 {dimension_numbers = #tpu.dot_dimension_numbers<[1], [0], [0], [1], [0, 0, 1, 1], [], []>} : vector<32x32xbf16>, vector<32x64xbf16>, vector<32x64xf32> -> vector<32x64xf32>
      %158 = arith.truncf %157 : vector<32x64xf32> to vector<32x64xbf16>
      %c0_85 = arith.constant 0 : index
      %c0_86 = arith.constant 0 : index
      %159 = vector.load %arg8[%c0_85, %c0_86] : memref<64x32xbf16, #tpu.memory_space<vmem>>, vector<64x32xbf16>
      %cst_87 = arith.constant dense<0.000000e+00> : vector<32x32xf32>
      %160 = tpu.matmul %158, %159, %cst_87 {dimension_numbers = #tpu.dot_dimension_numbers<[1], [0], [0], [1], [0, 0, 1, 1], [], []>} : vector<32x64xbf16>, vector<64x32xbf16>, vector<32x32xf32> -> vector<32x32xf32>
      %c0_88 = arith.constant 0 : index
      %c0_89 = arith.constant 0 : index
      %161 = vector.load %arg9[%c0_88, %c0_89] : memref<1x32xf32, #tpu.memory_space<vmem>>, vector<1x32xf32>
      %162 = vector.broadcast %161 : vector<1x32xf32> to vector<32x32xf32>
      %163 = arith.addf %160, %162 : vector<32x32xf32>
      %c0_90 = arith.constant 0 : index
      %c0_91 = arith.constant 0 : index
      %164 = vector.load %arg25[%c0_90, %c0_91] : memref<64x32xf32, #tpu.memory_space<vmem>>, vector<32x32xf32>
      tpu.vector_store %arg25[%c0_90, %c0_91], %163 {strides = array<i32>} : memref<64x32xf32, #tpu.memory_space<vmem>>, vector<32x32xf32>,
      %165 = vector.extract_strided_slice %148 {offsets = [32, 0], sizes = [32, 32], strides = [1, 1]} : vector<64x32xbf16> to vector<32x32xbf16>
      %cst_92 = arith.constant dense<0.000000e+00> : vector<32x64xf32>
      %166 = tpu.matmul %165, %155, %cst_92 {dimension_numbers = #tpu.dot_dimension_numbers<[1], [0], [0], [1], [0, 0, 1, 1], [], []>} : vector<32x32xbf16>, vector<32x64xbf16>, vector<32x64xf32> -> vector<32x64xf32>
      %167 = arith.truncf %166 : vector<32x64xf32> to vector<32x64xbf16>
      %c0_93 = arith.constant 0 : index
      %c0_94 = arith.constant 0 : index
      %168 = vector.load %arg8[%c0_93, %c0_94] : memref<64x32xbf16, #tpu.memory_space<vmem>>, vector<64x32xbf16>
      %cst_95 = arith.constant dense<0.000000e+00> : vector<32x32xf32>
      %169 = tpu.matmul %167, %168, %cst_95 {dimension_numbers = #tpu.dot_dimension_numbers<[1], [0], [0], [1], [0, 0, 1, 1], [], []>} : vector<32x64xbf16>, vector<64x32xbf16>, vector<32x32xf32> -> vector<32x32xf32>
      %c0_96 = arith.constant 0 : index
      %c0_97 = arith.constant 0 : index
      %170 = vector.load %arg9[%c0_96, %c0_97] : memref<1x32xf32, #tpu.memory_space<vmem>>, vector<1x32xf32>
      %171 = vector.broadcast %170 : vector<1x32xf32> to vector<32x32xf32>
      %172 = arith.addf %169, %171 : vector<32x32xf32>
      %c32 = arith.constant 32 : index
      %c0_98 = arith.constant 0 : index
      %173 = vector.load %arg25[%c32, %c0_98] : memref<64x32xf32, #tpu.memory_space<vmem>>, vector<32x32xf32>
      tpu.vector_store %arg25[%c32, %c0_98], %172 {strides = array<i32>} : memref<64x32xf32, #tpu.memory_space<vmem>>, vector<32x32xf32>,
      %c0_99 = arith.constant 0 : index
      %c0_100 = arith.constant 0 : index
      %174 = vector.load %arg25[%c0_99, %c0_100] : memref<64x32xf32, #tpu.memory_space<vmem>>, vector<64x32xf32>
      %175 = arith.truncf %174 : vector<64x32xf32> to vector<64x32xbf16>
      %c0_101 = arith.constant 0 : index
      %c0_102 = arith.constant 0 : index
      %176 = vector.load %arg11[%c0_101, %c0_102] : memref<32x64xbf16, #tpu.memory_space<vmem>>, vector<32x64xbf16>
      %cst_103 = arith.constant dense<0.000000e+00> : vector<64x64xf32>
      %177 = tpu.matmul %175, %176, %cst_103 {dimension_numbers = #tpu.dot_dimension_numbers<[1], [0], [0], [1], [0, 0, 1, 1], [], []>} : vector<64x32xbf16>, vector<32x64xbf16>, vector<64x64xf32> -> vector<64x64xf32>
      %178 = vector.extract_strided_slice %177 {offsets = [0, 0], sizes = [64, 32], strides = [1, 1]} : vector<64x64xf32> to vector<64x32xf32>
      %179 = arith.truncf %178 : vector<64x32xf32> to vector<64x32xbf16>
      %180 = tpu.transpose %179, [1, 0] : vector<64x32xbf16> -> vector<32x64xbf16>
      %c0_104 = arith.constant 0 : index
      %c0_105 = arith.constant 0 : index
      %181 = vector.load %arg26[%c0_104, %c0_105] : memref<32x64xbf16, #tpu.memory_space<vmem>>, vector<32x64xbf16>
      tpu.vector_store %arg26[%c0_104, %c0_105], %180 {strides = array<i32>} : memref<32x64xbf16, #tpu.memory_space<vmem>>, vector<32x64xbf16>,
      %182 = vector.extract_strided_slice %177 {offsets = [0, 32], sizes = [64, 32], strides = [1, 1]} : vector<64x64xf32> to vector<64x32xf32>
      %183 = arith.truncf %182 : vector<64x32xf32> to vector<64x32xbf16>
      %c0_106 = arith.constant 0 : index
      %c0_107 = arith.constant 0 : index
      %184 = vector.load %arg27[%c0_106, %c0_107] : memref<64x32xbf16, #tpu.memory_space<vmem>>, vector<64x32xbf16>
      tpu.vector_store %arg27[%c0_106, %c0_107], %183 {strides = array<i32>} : memref<64x32xbf16, #tpu.memory_space<vmem>>, vector<64x32xbf16>,
    } else {
    }
    %c32_i32 = arith.constant 32 : i32
    %3 = arith.muli %arg1, %c32_i32 : i32
    %4 = tpu.assume_multiple %3, 32 : i32
    %5 = arith.index_cast %4 : i32 to index
    %c0 = arith.constant 0 : index
    %6 = vector.load %arg25[%5, %c0] : memref<64x32xf32, #tpu.memory_space<vmem>>, vector<32x32xf32>
    %7 = arith.truncf %6 : vector<32x32xf32> to vector<32x32xbf16>
    %c0_2 = arith.constant 0 : index
    %c0_3 = arith.constant 0 : index
    %8 = vector.load %arg10[%c0_2, %c0_3] : memref<32x32xbf16, #tpu.memory_space<vmem>>, vector<32x32xbf16>
    %cst_4 = arith.constant dense<0.000000e+00> : vector<32x32xf32>
    %9 = tpu.matmul %7, %8, %cst_4 {dimension_numbers = #tpu.dot_dimension_numbers<[1], [0], [0], [1], [0, 0, 1, 1], [], []>} : vector<32x32xbf16>, vector<32x32xbf16>, vector<32x32xf32> -> vector<32x32xf32>
    %10 = arith.truncf %9 : vector<32x32xf32> to vector<32x32xbf16>
    %c0_5 = arith.constant 0 : index
    %c0_6 = arith.constant 0 : index
    %11 = vector.load %arg26[%c0_5, %c0_6] : memref<32x64xbf16, #tpu.memory_space<vmem>>, vector<32x64xbf16>
    %cst_7 = arith.constant dense<0.000000e+00> : vector<32x64xf32>
    %12 = tpu.matmul %10, %11, %cst_7 {dimension_numbers = #tpu.dot_dimension_numbers<[1], [0], [0], [1], [0, 0, 1, 1], [], []>} : vector<32x32xbf16>, vector<32x64xbf16>, vector<32x64xf32> -> vector<32x64xf32>
    %cst_8 = arith.constant dense<0xFF800000> : vector<32xf32>
    %13 = vector.multi_reduction <maximumf>, %12, %cst_8 [1] : vector<32x64xf32> to vector<32xf32>
    %14 = vector.shape_cast %13 : vector<32xf32> to vector<32x1xf32>
    %15 = vector.broadcast %14 : vector<32x1xf32> to vector<32x64xf32>
    %16 = arith.subf %12, %15 : vector<32x64xf32>
    %17 = arith.truncf %16 : vector<32x64xf32> to vector<32x64xbf16>
    %18 = math.exp %17 : vector<32x64xbf16>
    %19 = arith.extf %18 : vector<32x64xbf16> to vector<32x64xf32>
    %cst_9 = arith.constant dense<0.000000e+00> : vector<32xf32>
    %20 = vector.multi_reduction <add>, %19, %cst_9 [1] : vector<32x64xf32> to vector<32xf32>
    %21 = vector.shape_cast %20 : vector<32xf32> to vector<32x1xf32>
    %22 = tpu.reciprocal %21 {approx = true} : vector<32x1xf32> -> vector<32x1xf32>
    %c0_10 = arith.constant 0 : index
    %c0_11 = arith.constant 0 : index
    %23 = vector.load %arg27[%c0_10, %c0_11] : memref<64x32xbf16, #tpu.memory_space<vmem>>, vector<64x32xbf16>
    %cst_12 = arith.constant dense<0.000000e+00> : vector<32x32xf32>
    %24 = tpu.matmul %18, %23, %cst_12 {dimension_numbers = #tpu.dot_dimension_numbers<[1], [0], [0], [1], [0, 0, 1, 1], [], []>} : vector<32x64xbf16>, vector<64x32xbf16>, vector<32x32xf32> -> vector<32x32xf32>
    %25 = vector.broadcast %22 : vector<32x1xf32> to vector<32x32xf32>
    %26 = arith.mulf %24, %25 : vector<32x32xf32>
    %27 = arith.truncf %26 : vector<32x32xf32> to vector<32x32xbf16>
    %c0_13 = arith.constant 0 : index
    %c0_14 = arith.constant 0 : index
    %28 = vector.load %arg12[%c0_13, %c0_14] : memref<32x32xbf16, #tpu.memory_space<vmem>>, vector<32x32xbf16>
    %cst_15 = arith.constant dense<0.000000e+00> : vector<32x32xf32>
    %29 = tpu.matmul %27, %28, %cst_15 {dimension_numbers = #tpu.dot_dimension_numbers<[1], [0], [0], [1], [0, 0, 1, 1], [], []>} : vector<32x32xbf16>, vector<32x32xbf16>, vector<32x32xf32> -> vector<32x32xf32>
    %30 = arith.addf %6, %29 : vector<32x32xf32>
    %cst_16 = arith.constant dense<0.000000e+00> : vector<32xf32>
    %31 = vector.multi_reduction <add>, %30, %cst_16 [1] : vector<32x32xf32> to vector<32xf32>
    %32 = vector.shape_cast %31 : vector<32xf32> to vector<32x1xf32>
    %cst_17 = arith.constant 3.200000e+01 : f32
    %33 = vector.broadcast %cst_17 : f32 to vector<32x1xf32>
    %34 = arith.divf %32, %33 : vector<32x1xf32>
    %35 = arith.mulf %30, %30 : vector<32x32xf32>
    %cst_18 = arith.constant dense<0.000000e+00> : vector<32xf32>
    %36 = vector.multi_reduction <add>, %35, %cst_18 [1] : vector<32x32xf32> to vector<32xf32>
    %37 = vector.shape_cast %36 : vector<32xf32> to vector<32x1xf32>
    %cst_19 = arith.constant 3.200000e+01 : f32
    %38 = vector.broadcast %cst_19 : f32 to vector<32x1xf32>
    %39 = arith.divf %37, %38 : vector<32x1xf32>
    %40 = vector.broadcast %34 : vector<32x1xf32> to vector<32x32xf32>
    %41 = arith.subf %30, %40 : vector<32x32xf32>
    %42 = arith.mulf %34, %34 : vector<32x1xf32>
    %43 = arith.subf %39, %42 : vector<32x1xf32>
    %cst_20 = arith.constant 9.99999997E-7 : f32
    %44 = vector.broadcast %cst_20 : f32 to vector<32x1xf32>
    %45 = arith.addf %43, %44 : vector<32x1xf32>
    %46 = math.rsqrt %45 : vector<32x1xf32>
    %47 = vector.broadcast %46 : vector<32x1xf32> to vector<32x32xf32>
    %48 = arith.mulf %41, %47 : vector<32x32xf32>
    %c0_21 = arith.constant 0 : index
    %c0_22 = arith.constant 0 : index
    %49 = vector.load %arg13[%c0_21, %c0_22] : memref<1x32xf32, #tpu.memory_space<vmem>>, vector<1x32xf32>
    %50 = vector.broadcast %49 : vector<1x32xf32> to vector<32x32xf32>
    %51 = arith.mulf %48, %50 : vector<32x32xf32>
    %c0_23 = arith.constant 0 : index
    %c0_24 = arith.constant 0 : index
    %52 = vector.load %arg14[%c0_23, %c0_24] : memref<1x32xf32, #tpu.memory_space<vmem>>, vector<1x32xf32>
    %53 = vector.broadcast %52 : vector<1x32xf32> to vector<32x32xf32>
    %54 = arith.addf %51, %53 : vector<32x32xf32>
    %55 = arith.truncf %54 : vector<32x32xf32> to vector<32x32xbf16>
    %c0_25 = arith.constant 0 : index
    %c0_26 = arith.constant 0 : index
    %56 = vector.load %arg15[%c0_25, %c0_26] : memref<32x64xbf16, #tpu.memory_space<vmem>>, vector<32x64xbf16>
    %cst_27 = arith.constant dense<0.000000e+00> : vector<32x64xf32>
    %57 = tpu.matmul %55, %56, %cst_27 {dimension_numbers = #tpu.dot_dimension_numbers<[1], [0], [0], [1], [0, 0, 1, 1], [], []>} : vector<32x32xbf16>, vector<32x64xbf16>, vector<32x64xf32> -> vector<32x64xf32>
    %c0_28 = arith.constant 0 : index
    %c0_29 = arith.constant 0 : index
    %58 = vector.load %arg16[%c0_28, %c0_29] : memref<1x64xf32, #tpu.memory_space<vmem>>, vector<1x64xf32>
    %59 = vector.broadcast %58 : vector<1x64xf32> to vector<32x64xf32>
    %60 = arith.addf %57, %59 : vector<32x64xf32>
    %61 = arith.mulf %60, %60 : vector<32x64xf32>
    %62 = arith.mulf %60, %61 : vector<32x64xf32>
    %cst_30 = arith.constant 4.471500e-02 : f32
    %63 = vector.broadcast %cst_30 : f32 to vector<32x64xf32>
    %64 = arith.mulf %63, %62 : vector<32x64xf32>
    %65 = arith.addf %60, %64 : vector<32x64xf32>
    %cst_31 = arith.constant 0.797884583 : f32
    %66 = vector.broadcast %cst_31 : f32 to vector<32x64xf32>
    %67 = arith.mulf %66, %65 : vector<32x64xf32>
    %68 = math.tanh %67 : vector<32x64xf32>
    %cst_32 = arith.constant 1.000000e+00 : f32
    %69 = vector.broadcast %cst_32 : f32 to vector<32x64xf32>
    %70 = arith.addf %69, %68 : vector<32x64xf32>
    %cst_33 = arith.constant 5.000000e-01 : f32
    %71 = vector.broadcast %cst_33 : f32 to vector<32x64xf32>
    %72 = arith.mulf %71, %70 : vector<32x64xf32>
    %73 = arith.mulf %60, %72 : vector<32x64xf32>
    %74 = arith.truncf %73 : vector<32x64xf32> to vector<32x64xbf16>
    %c0_34 = arith.constant 0 : index
    %c0_35 = arith.constant 0 : index
    %75 = vector.load %arg17[%c0_34, %c0_35] : memref<64x32xbf16, #tpu.memory_space<vmem>>, vector<64x32xbf16>
    %cst_36 = arith.constant dense<0.000000e+00> : vector<32x32xf32>
    %76 = tpu.matmul %74, %75, %cst_36 {dimension_numbers = #tpu.dot_dimension_numbers<[1], [0], [0], [1], [0, 0, 1, 1], [], []>} : vector<32x64xbf16>, vector<64x32xbf16>, vector<32x32xf32> -> vector<32x32xf32>
    %77 = arith.addf %54, %76 : vector<32x32xf32>
    %c0_37 = arith.constant 0 : index
    %c0_38 = arith.constant 0 : index
    %78 = vector.load %arg18[%c0_37, %c0_38] : memref<1x32xf32, #tpu.memory_space<vmem>>, vector<1x32xf32>
    %79 = vector.broadcast %78 : vector<1x32xf32> to vector<32x32xf32>
    %80 = arith.addf %77, %79 : vector<32x32xf32>
    %cst_39 = arith.constant dense<0.000000e+00> : vector<32xf32>
    %81 = vector.multi_reduction <add>, %80, %cst_39 [1] : vector<32x32xf32> to vector<32xf32>
    %82 = vector.shape_cast %81 : vector<32xf32> to vector<32x1xf32>
    %cst_40 = arith.constant 3.200000e+01 : f32
    %83 = vector.broadcast %cst_40 : f32 to vector<32x1xf32>
    %84 = arith.divf %82, %83 : vector<32x1xf32>
    %85 = arith.mulf %80, %80 : vector<32x32xf32>
    %cst_41 = arith.constant dense<0.000000e+00> : vector<32xf32>
    %86 = vector.multi_reduction <add>, %85, %cst_41 [1] : vector<32x32xf32> to vector<32xf32>
    %87 = vector.shape_cast %86 : vector<32xf32> to vector<32x1xf32>
    %cst_42 = arith.constant 3.200000e+01 : f32
    %88 = vector.broadcast %cst_42 : f32 to vector<32x1xf32>
    %89 = arith.divf %87, %88 : vector<32x1xf32>
    %90 = vector.broadcast %84 : vector<32x1xf32> to vector<32x32xf32>
    %91 = arith.subf %80, %90 : vector<32x32xf32>
    %92 = arith.mulf %84, %84 : vector<32x1xf32>
    %93 = arith.subf %89, %92 : vector<32x1xf32>
    %cst_43 = arith.constant 9.99999997E-7 : f32
    %94 = vector.broadcast %cst_43 : f32 to vector<32x1xf32>
    %95 = arith.addf %93, %94 : vector<32x1xf32>
    %96 = math.rsqrt %95 : vector<32x1xf32>
    %97 = vector.broadcast %96 : vector<32x1xf32> to vector<32x32xf32>
    %98 = arith.mulf %91, %97 : vector<32x32xf32>
    %c0_44 = arith.constant 0 : index
    %c0_45 = arith.constant 0 : index
    %99 = vector.load %arg19[%c0_44, %c0_45] : memref<1x32xf32, #tpu.memory_space<vmem>>, vector<1x32xf32>
    %100 = vector.broadcast %99 : vector<1x32xf32> to vector<32x32xf32>
    %101 = arith.mulf %98, %100 : vector<32x32xf32>
    %c0_46 = arith.constant 0 : index
    %c0_47 = arith.constant 0 : index
    %102 = vector.load %arg20[%c0_46, %c0_47] : memref<1x32xf32, #tpu.memory_space<vmem>>, vector<1x32xf32>
    %103 = vector.broadcast %102 : vector<1x32xf32> to vector<32x32xf32>
    %104 = arith.addf %101, %103 : vector<32x32xf32>
    %c0_48 = arith.constant 0 : index
    %105 = arith.index_cast %4 : i32 to index
    %c0_49 = arith.constant 0 : index
    %106 = vector.load %arg2[%c0_48, %105, %c0_49] : memref<1x64x12xbf16, #tpu.memory_space<vmem>>, vector<1x32x12xbf16>
    %107 = vector.shape_cast %106 : vector<1x32x12xbf16> to vector<32x12xbf16>
    %cst_50 = arith.constant 7.873530e-03 : bf16
    %108 = vector.broadcast %cst_50 : bf16 to vector<32x12xbf16>
    %109 = arith.mulf %107, %108 : vector<32x12xbf16>
    %cst_51 = arith.constant 1.000000e+00 : bf16
    %110 = vector.broadcast %cst_51 : bf16 to vector<32x12xbf16>
    %111 = arith.subf %109, %110 : vector<32x12xbf16>
    %c0_52 = arith.constant 0 : index
    %c0_53 = arith.constant 0 : index
    %112 = vector.load %arg6[%c0_52, %c0_53] : memref<12x32xbf16, #tpu.memory_space<vmem>>, vector<12x32xbf16>
    %cst_54 = arith.constant dense<0.000000e+00> : vector<32x32xf32>
    %113 = tpu.matmul %111, %112, %cst_54 {dimension_numbers = #tpu.dot_dimension_numbers<[1], [0], [0], [1], [0, 0, 1, 1], [], []>} : vector<32x12xbf16>, vector<12x32xbf16>, vector<32x32xf32> -> vector<32x32xf32>
    %c0_55 = arith.constant 0 : index
    %c0_56 = arith.constant 0 : index
    %114 = vector.load %arg7[%c0_55, %c0_56] : memref<1x32xf32, #tpu.memory_space<vmem>>, vector<1x32xf32>
    %115 = vector.broadcast %114 : vector<1x32xf32> to vector<32x32xf32>
    %116 = arith.addf %113, %115 : vector<32x32xf32>
    %117 = arith.truncf %104 : vector<32x32xf32> to vector<32x32xbf16>
    %c0_57 = arith.constant 0 : index
    %c0_58 = arith.constant 0 : index
    %118 = vector.load %arg21[%c0_57, %c0_58] : memref<32x128xbf16, #tpu.memory_space<vmem>>, vector<32x128xbf16>
    %cst_59 = arith.constant dense<0.000000e+00> : vector<32x128xf32>
    %119 = tpu.matmul %117, %118, %cst_59 {dimension_numbers = #tpu.dot_dimension_numbers<[1], [0], [0], [1], [0, 0, 1, 1], [], []>} : vector<32x32xbf16>, vector<32x128xbf16>, vector<32x128xf32> -> vector<32x128xf32>
    %120 = arith.truncf %116 : vector<32x32xf32> to vector<32x32xbf16>
    %c0_60 = arith.constant 0 : index
    %c0_61 = arith.constant 0 : index
    %121 = vector.load %arg22[%c0_60, %c0_61] : memref<32x128xbf16, #tpu.memory_space<vmem>>, vector<32x128xbf16>
    %cst_62 = arith.constant dense<0.000000e+00> : vector<32x128xf32>
    %122 = tpu.matmul %120, %121, %cst_62 {dimension_numbers = #tpu.dot_dimension_numbers<[1], [0], [0], [1], [0, 0, 1, 1], [], []>} : vector<32x32xbf16>, vector<32x128xbf16>, vector<32x128xf32> -> vector<32x128xf32>
    %123 = arith.addf %119, %122 : vector<32x128xf32>
    %c0_63 = arith.constant 0 : index
    %c0_64 = arith.constant 0 : index
    %124 = vector.load %arg23[%c0_63, %c0_64] : memref<1x128xf32, #tpu.memory_space<vmem>>, vector<1x128xf32>
    %125 = vector.broadcast %124 : vector<1x128xf32> to vector<32x128xf32>
    %126 = arith.addf %123, %125 : vector<32x128xf32>
    %127 = arith.truncf %126 : vector<32x128xf32> to vector<32x128xbf16>
    %c0_65 = arith.constant 0 : index
    %c0_66 = arith.constant 0 : index
    %c0_67 = arith.constant 0 : index
    %128 = vector.load %arg24[%c0_65, %c0_66, %c0_67] : memref<1x32x128xbf16, #tpu.memory_space<vmem>>, vector<1x32x128xbf16>
    %129 = vector.shape_cast %128 : vector<1x32x128xbf16> to vector<32x128xbf16>
    %130 = vector.shape_cast %127 : vector<32x128xbf16> to vector<1x32x128xbf16>
    tpu.vector_store %arg24[%c0_65, %c0_66, %c0_67], %130 {strides = array<i32>} : memref<1x32x128xbf16, #tpu.memory_space<vmem>>, vector<1x32x128xbf16>,
    return
  }
  func.func @transform_0(%arg0: i32, %arg1: i32) -> (i32, i32, i32) {
    %c0_i32 = arith.constant 0 : i32
    %c0_i32_0 = arith.constant 0 : i32
    %c0_i32_1 = arith.constant 0 : i32
    return %arg0, %c0_i32, %c0_i32_0 : i32, i32, i32
  }
  func.func @transform_1(%arg0: i32, %arg1: i32) -> (i32, i32, i32) {
    %c0_i32 = arith.constant 0 : i32
    %c0_i32_0 = arith.constant 0 : i32
    %c0_i32_1 = arith.constant 0 : i32
    return %arg0, %c0_i32, %c0_i32_0 : i32, i32, i32
  }
  func.func @transform_2(%arg0: i32, %arg1: i32) -> (i32, i32) {
    %c0_i32 = arith.constant 0 : i32
    %c0_i32_0 = arith.constant 0 : i32
    %c0_i32_1 = arith.constant 0 : i32
    return %c0_i32, %c0_i32_0 : i32, i32
  }
  func.func @transform_3(%arg0: i32, %arg1: i32) -> (i32, i32) {
    %c0_i32 = arith.constant 0 : i32
    %c0_i32_0 = arith.constant 0 : i32
    %c0_i32_1 = arith.constant 0 : i32
    return %c0_i32, %c0_i32_0 : i32, i32
  }
  func.func @transform_4(%arg0: i32, %arg1: i32) -> (i32, i32) {
    %c0_i32 = arith.constant 0 : i32
    %c0_i32_0 = arith.constant 0 : i32
    %c0_i32_1 = arith.constant 0 : i32
    return %c0_i32, %c0_i32_0 : i32, i32
  }
  func.func @transform_5(%arg0: i32, %arg1: i32) -> (i32, i32) {
    %c0_i32 = arith.constant 0 : i32
    %c0_i32_0 = arith.constant 0 : i32
    %c0_i32_1 = arith.constant 0 : i32
    return %c0_i32, %c0_i32_0 : i32, i32
  }
  func.func @transform_6(%arg0: i32, %arg1: i32) -> (i32, i32) {
    %c0_i32 = arith.constant 0 : i32
    %c0_i32_0 = arith.constant 0 : i32
    %c0_i32_1 = arith.constant 0 : i32
    return %c0_i32, %c0_i32_0 : i32, i32
  }
  func.func @transform_7(%arg0: i32, %arg1: i32) -> (i32, i32) {
    %c0_i32 = arith.constant 0 : i32
    %c0_i32_0 = arith.constant 0 : i32
    %c0_i32_1 = arith.constant 0 : i32
    return %c0_i32, %c0_i32_0 : i32, i32
  }
  func.func @transform_8(%arg0: i32, %arg1: i32) -> (i32, i32) {
    %c0_i32 = arith.constant 0 : i32
    %c0_i32_0 = arith.constant 0 : i32
    %c0_i32_1 = arith.constant 0 : i32
    return %c0_i32, %c0_i32_0 : i32, i32
  }
  func.func @transform_9(%arg0: i32, %arg1: i32) -> (i32, i32) {
    %c0_i32 = arith.constant 0 : i32
    %c0_i32_0 = arith.constant 0 : i32
    %c0_i32_1 = arith.constant 0 : i32
    return %c0_i32, %c0_i32_0 : i32, i32
  }
  func.func @transform_10(%arg0: i32, %arg1: i32) -> (i32, i32) {
    %c0_i32 = arith.constant 0 : i32
    %c0_i32_0 = arith.constant 0 : i32
    %c0_i32_1 = arith.constant 0 : i32
    return %c0_i32, %c0_i32_0 : i32, i32
  }
  func.func @transform_11(%arg0: i32, %arg1: i32) -> (i32, i32) {
    %c0_i32 = arith.constant 0 : i32
    %c0_i32_0 = arith.constant 0 : i32
    %c0_i32_1 = arith.constant 0 : i32
    return %c0_i32, %c0_i32_0 : i32, i32
  }
  func.func @transform_12(%arg0: i32, %arg1: i32) -> (i32, i32) {
    %c0_i32 = arith.constant 0 : i32
    %c0_i32_0 = arith.constant 0 : i32
    %c0_i32_1 = arith.constant 0 : i32
    return %c0_i32, %c0_i32_0 : i32, i32
  }
  func.func @transform_13(%arg0: i32, %arg1: i32) -> (i32, i32) {
    %c0_i32 = arith.constant 0 : i32
    %c0_i32_0 = arith.constant 0 : i32
    %c0_i32_1 = arith.constant 0 : i32
    return %c0_i32, %c0_i32_0 : i32, i32
  }
  func.func @transform_14(%arg0: i32, %arg1: i32) -> (i32, i32) {
    %c0_i32 = arith.constant 0 : i32
    %c0_i32_0 = arith.constant 0 : i32
    %c0_i32_1 = arith.constant 0 : i32
    return %c0_i32, %c0_i32_0 : i32, i32
  }
  func.func @transform_15(%arg0: i32, %arg1: i32) -> (i32, i32) {
    %c0_i32 = arith.constant 0 : i32
    %c0_i32_0 = arith.constant 0 : i32
    %c0_i32_1 = arith.constant 0 : i32
    return %c0_i32, %c0_i32_0 : i32, i32
  }
  func.func @transform_16(%arg0: i32, %arg1: i32) -> (i32, i32) {
    %c0_i32 = arith.constant 0 : i32
    %c0_i32_0 = arith.constant 0 : i32
    %c0_i32_1 = arith.constant 0 : i32
    return %c0_i32, %c0_i32_0 : i32, i32
  }
  func.func @transform_17(%arg0: i32, %arg1: i32) -> (i32, i32) {
    %c0_i32 = arith.constant 0 : i32
    %c0_i32_0 = arith.constant 0 : i32
    %c0_i32_1 = arith.constant 0 : i32
    return %c0_i32, %c0_i32_0 : i32, i32
  }
  func.func @transform_18(%arg0: i32, %arg1: i32) -> (i32, i32) {
    %c0_i32 = arith.constant 0 : i32
    %c0_i32_0 = arith.constant 0 : i32
    %c0_i32_1 = arith.constant 0 : i32
    return %c0_i32, %c0_i32_0 : i32, i32
  }
  func.func @transform_19(%arg0: i32, %arg1: i32) -> (i32, i32) {
    %c0_i32 = arith.constant 0 : i32
    %c0_i32_0 = arith.constant 0 : i32
    %c0_i32_1 = arith.constant 0 : i32
    return %c0_i32, %c0_i32_0 : i32, i32
  }
  func.func @transform_20(%arg0: i32, %arg1: i32) -> (i32, i32) {
    %c0_i32 = arith.constant 0 : i32
    %c0_i32_0 = arith.constant 0 : i32
    %c0_i32_1 = arith.constant 0 : i32
    return %c0_i32, %c0_i32_0 : i32, i32
  }
  func.func @transform_21(%arg0: i32, %arg1: i32) -> (i32, i32) {
    %c0_i32 = arith.constant 0 : i32
    %c0_i32_0 = arith.constant 0 : i32
    %c0_i32_1 = arith.constant 0 : i32
    return %c0_i32, %c0_i32_0 : i32, i32
  }
  func.func @transform_22(%arg0: i32, %arg1: i32) -> (i32, i32, i32) {
    %c0_i32 = arith.constant 0 : i32
    %c0_i32_0 = arith.constant 0 : i32
    return %arg0, %arg1, %c0_i32 : i32, i32, i32
  }
}

</mosaic_0001>

<bundles_post_ra>
// kernel: tpu_custom_call.1
= control target key start
LH: loop header
LB: loop body
LE: loop exit
PB: predicated region body
PF: predicated region fallthrough
CT: control target
= control target key end

     0   :  { %s3384_s0 = inlined_call_operand.vmem [shape: bf16[2,64,12], index: 0, kind: input, shape index: {}]   ;;  %s3385_s1 = inlined_call_operand.vmem [shape: bf16[2,64,12], index: 1, kind: input, shape index: {}]   ;;  %s3386_s2 = inlined_call_operand.vmem [shape: bf16[12,32], index: 2, kind: input, shape index: {}]   ;;  %s3387_s3 = inlined_call_operand.vmem [shape: f32[1,32], index: 3, kind: input, shape index: {}]   ;;  %s3388_s4 = inlined_call_operand.vmem [shape: bf16[12,32], index: 4, kind: input, shape index: {}]   ;;  %s3389_s5 = inlined_call_operand.vmem [shape: f32[1,32], index: 5, kind: input, shape index: {}]   ;;  %s3390_s6 = inlined_call_operand.vmem [shape: bf16[64,32], index: 6, kind: input, shape index: {}]   ;;  %s3391_s7 = inlined_call_operand.vmem [shape: f32[1,32], index: 7, kind: input, shape index: {}]   ;;  %s3392_s8 = inlined_call_operand.vmem [shape: bf16[32,32], index: 8, kind: input, shape index: {}]   ;;  %s3393_s9 = inlined_call_operand.vmem [shape: bf16[32,64], index: 9, kind: input, shape index: {}]   ;;  %s3394_s10 = inlined_call_operand.vmem [shape: bf16[32,32], index: 10, kind: input, shape index: {}]   ;;  %s3395_s11 = inlined_call_operand.vmem [shape: f32[1,32], index: 11, kind: input, shape index: {}]   ;;  %s3396_s12 = inlined_call_operand.vmem [shape: f32[1,32], index: 12, kind: input, shape index: {}]   ;;  %s3397_s13 = inlined_call_operand.vmem [shape: bf16[32,64], index: 13, kind: input, shape index: {}]   ;;  %s3398_s14 = inlined_call_operand.vmem [shape: f32[1,64], index: 14, kind: input, shape index: {}]   ;;  %s3399_s15 = inlined_call_operand.vmem [shape: bf16[64,32], index: 15, kind: input, shape index: {}]   ;;  %s3400_s16 = inlined_call_operand.vmem [shape: f32[1,32], index: 16, kind: input, shape index: {}]   ;;  %s3401_s17 = inlined_call_operand.vmem [shape: f32[1,32], index: 17, kind: input, shape index: {}]   ;;  %s3402_s18 = inlined_call_operand.vmem [shape: f32[1,32], index: 18, kind: input, shape index: {}]   ;;  %s3403_s19 = inlined_call_operand.vmem [shape: bf16[32,128], index: 19, kind: input, shape index: {}]   ;;  %s3404_s20 = inlined_call_operand.vmem [shape: bf16[32,128], index: 20, kind: input, shape index: {}]   ;;  %s3405_s21 = inlined_call_operand.vmem [shape: f32[1,128], index: 21, kind: input, shape index: {}]   ;;  %s3406_s22 = inlined_call_operand.hbm [shape: bf16[2,64,128], index: 22, kind: output, shape index: {}]  }
   0x1   :  { %3425 = sst [smem:[#allocation19_spill]] %s3384_s0 }
   0x2   :  { %3426 = sst [smem:[#allocation20_spill]] %s3385_s1 }
   0x3   :  { %3427 = sst [smem:[#allocation21_spill]] %s3386_s2 }
   0x4   :  { %3428 = sst [smem:[#allocation22_spill]] %s3387_s3 }
   0x5   :  { %3429 = sst [smem:[#allocation23_spill]] %s3388_s4 }
   0x6   :  { %3430 = sst [smem:[#allocation24_spill]] %s3389_s5 }
   0x7   :  { %3431 = sst [smem:[#allocation25_spill]] %s3390_s6 }
   0x8   :  { %3432 = sst [smem:[#allocation26_spill]] %s3391_s7 }
   0x9   :  { %3433 = sst [smem:[#allocation27_spill]] %s3392_s8 }
   0xa   :  { %3434 = sst [smem:[#allocation28_spill]] %s3405_s21 }
   0xb   :  { %3435 = sst [smem:[#allocation29_spill]] %s3406_s22 }
   0xc   :  { %27 = vsyncpa [#allocation6], 0 }
   0xd   :  { %29 = vsyncpa [#allocation6 + $0x1], 0  ;;  %s2878_s3 = smov 0   ;;  %s2880_s28 = smov 0  }
   0xe   :  { %s2882_s29 = smov 0   ;;  %s2884_s30 = smov 0  }
   0xf   :  { %s2886_s4 = smov 0   ;;  %s2888_s0 = smov 0  }
  0x10   :  { %s2890_s23 = smov 0   ;;  %s2892_s1 = smov 0  }
  0x11 LB: > { %3436 = sst [smem:[#allocation8_spill]] %s2729_s3  ;;  %s2233_s5 = sadd.s32 4294967295, %s2757_s1   ;;  %s2757_s1 = sphi %s2892_s1, %s35_s1   ;;  %s2753_s23 = sphi %s2890_s23, %s3472_s23   ;;  %s2749_s0 = sphi %s2888_s0, %s3471_s0   ;;  %s2745_s4 = sphi %s2886_s4, %s3470_s4   ;;  %s2741_s30 = sphi %s2884_s30, %s3469_s30   ;;  %s2737_s29 = sphi %s2882_s29, %s3468_s29   ;;  %s2733_s28 = sphi %s2880_s28, %s3467_s28   ;;  %s2729_s3 = sphi %s2878_s3, %s3466_s3  }
  0x12   : > { %3437 = sst [smem:[#allocation9_spill]] %s2733_s28  ;;  %s2234_s24 = sadd.s32 4294967294, %s2757_s1  }
  0x13   : > { %3438 = sst [smem:[#allocation10_spill]] %s2737_s29  ;;  %s44_s6 = sadd.s32 1, %s2749_s0 }
  0x14   : > { %3439 = sst [smem:[#allocation11_spill]] %s2749_s0  ;;  %p45_p0 = scmp.ge.s32.totalorder %s44_s6, 2 }
  0x15   : > { %3440 = sst [smem:[#allocation12_spill]] %s2753_s23  ;;  %s47_s25 = sadd.s32 1, %s2753_s23 }
  0x16   : > { %3441 = sst [smem:[#allocation13_spill]] %s2757_s1  ;;  %p538_p1 = scmp.ne.s32.totalorder %s2737_s29, %s2733_s28 }
  0x17   : > { %p539_p2 = scmp.eq.s32.totalorder %s2233_s5, 3  ;;  %s3474_s6 = smov (%p45_p0, %s44_s6), 0 }
  0x18   : > { %3442 = sst [smem:[#allocation14_spill]] %s3474_s6  ;;  %s3476_s25 = smov (!%p45_p0, %s47_s25), %s2753_s23 }
  0x19   : > { %s524_s26 = ssub.s32 %s2749_s0, %s3474_s6  ;;  %p2929_p3 = por %p539_p2, %p538_p1 }
  0x1a   : > { %p49_p4 = scmp.ge.s32.totalorder %s3476_s25, 2  ;;  %p544_p5 = scmp.ne.s32.totalorder %s2733_s28, %s2729_s3 }
  0x1b   : > { %s3443_s2 = scalar_select %p2929_p3, 1, 0 }
  0x1c   : > { %p545_p6 = scmp.eq.s32.totalorder %s2234_s24, 3  ;;  %p2237_p7 = scmp.ge.s32.totalorder %s2757_s1, 1 }
  0x1d   : > { %3444 = sst [smem:[#allocation15_spill]] %s3443_s2  ;;  %s3478_s25 = smov (%p49_p4, %s3476_s25), 0 }
  0x1e   : > { %3445 = sst [smem:[#allocation16_spill]] %s3478_s25  ;;  %p2938_p8 = por %p545_p6, %p544_p5 }
  0x1f   : > { %p639_p9 = scmp.lt.s32.totalorder %s2757_s1, 5  ;;  %s523_s5 = ssub.s32 %s2753_s23, %s3478_s25 }
  0x20   : > { %s3446_s27 = scalar_select %p2938_p8, 1, 0 }
  0x21   : > { %s528_s22 = sadd.s32 1, %s2737_s29  ;;  %s525_s21 = sor.u32 %s524_s26, %s523_s5 }
  0x22   : > { %3447 = sst [smem:[#allocation17_spill]] %s3446_s27  ;;  %p640_p10 = pnand %p2237_p7, %p639_p9 }
  0x23   : > { %p526_p11 = scmp.eq.s32.totalorder %s525_s21, 0  ;;  %s3423_s24 = sand.u32 (!%p640_p10), 1, %s2733_s28  }
  0x24   : > { %643 = sbr.rel (%p640_p10) target bundleno = 2543 (0x9ef), region = 108  ;;  %p706_p12 = scmp.lt.s32.totalorder (!%p640_p10), %s2745_s4, 1 }
  0x25   : > { %s2947_s6 = scalar_select %p526_p11, %s2737_s29, %s528_s22  }
  0x26   : > { %s2238_s0 = sshll.u32 (!%p640_p10), %s3423_s24, 4  ;;  %s3449_s25 = sld [smem:[#allocation19_spill]] (!%p640_p10) }
  0x27   : > { %3448 = sst [smem:[#allocation18_spill]] %s2947_s6  ;;  %s2964_s6 = scalar_lea.vmem (!%p640_p10), [#allocation5], %s2238_s0 }
  0x28   : > { %s3450_s22 = sld [smem:[#allocation20_spill]] (!%p640_p10)  ;;  %p2243_p13 = scmp.ne.s32.totalorder (!%p640_p10), %s2741_s30, 0 }
  0x29   : > { %s707_s3 = scalar_select %p706_p12, %s2745_s4, 1 }
  0x2a   : > { %721 = sbr.rel (%p2243_p13) target bundleno = 1077 (0x435), region = 112  ;;  %s3451_s24 = sld [smem:[#allocation21_spill]] (!%p2243_p13) }
  0x2b   : > { %s2438_s2 = sshll.u32 %s707_s3, 5  ;;  %s3452_s0 = sld [smem:[#allocation22_spill]] (!%p2243_p13) }
  0x2c   : > { %s2957_s23 = scalar_lea.vmem %s3449_s25, %s2438_s2  ;;  %s3453_s27 = sld [smem:[#allocation25_spill]] (!%p2243_p13) }
  0x2d   : > { %s3454_s7 = sld [smem:[#allocation26_spill]] (!%p2243_p13)  ;;  %s2759_s25 = smov (!%p2243_p13), 96  }
  0x2e   : > { %s2962_s5 = scalar_lea.vmem %s3450_s22, %s2438_s2 }
  0x2f   : > { %vm850_vm0 = vcmask 1045504   ;;  %v2522_v2 = vld [vmem:[%s2957_s23 + $0x8] sm:$0xff]   ;;  %v2523_v6 = vld [vmem:[%s2957_s23 + $0x10] sm:$0xff]   ;;  %vm837_vm1 = vcmask 97280   ;;  %v2489_v25 = vld [vmem:[%s2962_s5] sm:$0xff]   ;;  %vm946_vm2 = vcmask 261120  }
  0x30   : > { %v2262_v0 = vld [vmem:[%s3451_s24] sm:$0xf]  ;;  %v2440_v1 = vld [vmem:[%s3451_s24] sm:$0x30]  ;;  %v2478_v4 = vunpack.c.l.bf16 %v2522_v2  ;;  %v2479_v5 = vunpack.c.h.bf16 %v2522_v2  ;;  %v2482_v12 = vunpack.c.l.bf16 %v2523_v6  ;;  %v2483_v13 = vunpack.c.h.bf16 %v2523_v6  ;;  %v2525_v37 = vld [vmem:[%s2962_s5 + $0x8] sm:$0xff]  }
  0x31   : > { %v2263_v3 = vor.u32 %v2440_v1, %v2262_v0  ;;  %v2490_v28 = vunpack.c.l.bf16 %v2489_v25  ;;  %v2491_v29 = vunpack.c.h.bf16 %v2489_v25  ;;  %v2494_v40 = vunpack.c.l.bf16 %v2525_v37  ;;  %v2526_v49 = vld [vmem:[%s2962_s5 + $0x10] sm:$0xff]   ;;  %v2473_v59 = vld [vmem:[%s2957_s23] sm:$0xff]   ;;  %v2527_v2 = vld [vmem:[%s2962_s5 + $0x18] sm:$0xff]  }
  0x32   : > { %v740_v8 = vmul.f32 0.007873535, %v2478_v4  ;;  %v741_v9 = vmul.f32 0.007873535, %v2479_v5  ;;  %v742_v18 = vmul.f32 0.007873535, %v2482_v12  ;;  %v743_v19 = vmul.f32 0.007873535, %v2483_v13  ;;  %v2990_v25 = vld [vmem:[%s3452_s0] ss:$0 sm:$0xff] }
  0x33   : > { %v852_v7 = vsel %vm850_vm0, %v2263_v3, 0  ;;  %v790_v31 = vmul.f32 0.007873535, %v2490_v28  ;;  %v791_v32 = vmul.f32 0.007873535, %v2491_v29  ;;  %v2495_v41 = vunpack.c.h.bf16 %v2525_v37 }
  0x34   : > { %2530 = vmatpush.bf16.msra.mxu1 %v852_v7  ;;  %861 = vmatpush.bf16.msra.mxu0 %v852_v7  ;;  %v748_v10 = vpack.c.bf16 %v740_v8, %v740_v8  ;;  %v749_v11 = vpack.c.bf16 %v741_v9, %v741_v9  ;;  %v750_v21 = vpack.c.bf16 %v742_v18, %v742_v18  ;;  %v792_v43 = vmul.f32 0.007873535, %v2494_v40 }
  0x35   : > { %2531 = vmatpush.bf16.msra.mxu3 %v852_v7  ;;  %v751_v22 = vpack.c.bf16 %v743_v19, %v743_v19  ;;  %v798_v33 = vpack.c.bf16 %v790_v31, %v790_v31  ;;  %v799_v34 = vpack.c.bf16 %v791_v32, %v791_v32  ;;  %v793_v44 = vmul.f32 0.007873535, %v2495_v41 }
  0x36   : > { %v756_v14 = vunpack.c.l.bf16 %v748_v10  ;;  %v757_v15 = vunpack.c.l.bf16 %v749_v11  ;;  %v758_v23 = vunpack.c.l.bf16 %v750_v21  ;;  %v800_v45 = vpack.c.bf16 %v792_v43, %v792_v43 }
  0x37   : > { %v759_v24 = vunpack.c.l.bf16 %v751_v22  ;;  %v806_v35 = vunpack.c.l.bf16 %v798_v33  ;;  %v807_v36 = vunpack.c.l.bf16 %v799_v34  ;;  %v801_v46 = vpack.c.bf16 %v793_v44, %v793_v44 }
  0x38   : > { %910 = vmatpush.bf16.msrb.mxu1 %v852_v7  ;;  %v2246_v16 = vadd.f32 -1.0, %v756_v14  ;;  %v2247_v17 = vadd.f32 -1.0, %v757_v15  ;;  %v2248_v26 = vadd.f32 -1.0, %v758_v23  ;;  %v808_v47 = vunpack.c.l.bf16 %v800_v45 }
  0x39   : > { %v2249_v27 = vadd.f32 -1.0, %v759_v24  ;;  %v2252_v38 = vadd.f32 -1.0, %v806_v35  ;;  %v2253_v39 = vadd.f32 -1.0, %v807_v36  ;;  %v809_v48 = vunpack.c.l.bf16 %v801_v46 }
  0x3a   : > { %v771_v20 = vpack.c.bf16 %v2247_v17, %v2246_v16  ;;  %v2254_v50 = vadd.f32 -1.0, %v808_v47  ;;  %v2498_v52 = vunpack.c.l.bf16 %v2526_v49  ;;  %v2499_v53 = vunpack.c.h.bf16 %v2526_v49 }
  0x3b   : > { %v772_v30 = vpack.c.bf16 %v2249_v27, %v2248_v26  ;;  %v822_v42 = vpack.c.bf16 %v2253_v39, %v2252_v38  ;;  %v2255_v51 = vadd.f32 -1.0, %v809_v48  ;;  %v2474_v60 = vunpack.c.l.bf16 %v2473_v59  ;;  %v2444_v48 = vld [vmem:[%s3453_s27 + $0x18] sm:$0xff] }
  0x3c   : > { %2265 = vmatmul.msk.bf16.vlgmr.msra.gmra.mxu1 %vm837_vm1, %v771_v20  ;;  %v794_v55 = vmul.f32 0.007873535, %v2498_v52  ;;  %v795_v56 = vmul.f32 0.007873535, %v2499_v53  ;;  %v2475_v61 = vunpack.c.h.bf16 %v2473_v59  ;;  %v2502_v9 = vunpack.c.l.bf16 %v2527_v2  ;;  %1033 = vmatpush.bf16.msrb.mxu3 %v2444_v48  ;;  %v2611_v48 = vld [vmem:[%s3454_s7] ss:$0 sm:$0xff] }
  0x3d   : > { %v823_v54 = vpack.c.bf16 %v2255_v51, %v2254_v50  ;;  %v738_v62 = vmul.f32 0.007873535, %v2474_v60  ;;  %v2503_v10 = vunpack.c.h.bf16 %v2527_v2  ;;  %v2443_v50 = vld [vmem:[%s3453_s27 + $0x10] sm:$0xff]  ;;  %v2524_v51 = vld [vmem:[%s2957_s23 + $0x18] sm:$0xff]   ;;  %vm1022_vm3 = vcmask 523264  }
  0x3e   : > { %v802_v57 = vpack.c.bf16 %v794_v55, %v794_v55  ;;  %v803_v58 = vpack.c.bf16 %v795_v56, %v795_v56  ;;  %v739_v63 = vmul.f32 0.007873535, %v2475_v61  ;;  %v796_v15 = vmul.f32 0.007873535, %v2502_v9 }
  0x3f   : > { %v746_v3 = vpack.c.bf16 %v738_v62, %v738_v62  ;;  %v797_v16 = vmul.f32 0.007873535, %v2503_v10  ;;  %v2486_v52 = vunpack.c.l.bf16 %v2524_v51  ;;  %v2487_v53 = vunpack.c.h.bf16 %v2524_v51  ;;  %v2441_v62 = vld [vmem:[%s3453_s27] sm:$0xff] }
  0x40   : > { %v810_v0 = vunpack.c.l.bf16 %v802_v57  ;;  %v811_v1 = vunpack.c.l.bf16 %v803_v58  ;;  %v747_v4 = vpack.c.bf16 %v739_v63, %v739_v63  ;;  %v804_v17 = vpack.c.bf16 %v796_v15, %v796_v15  ;;  %1034 = vmatpush.bf16.msrb.mxu3 %v2443_v50  ;;  %v2442_v58 = vld [vmem:[%s3453_s27 + $0x8] sm:$0xff]  ;;  %v2445_v50 = vld [vmem:[%s3453_s27] sm:$0xff] }
  0x41   : > { %v754_v5 = vunpack.c.l.bf16 %v746_v3  ;;  %v805_v18 = vpack.c.bf16 %v797_v16, %v797_v16  ;;  %v745_v55 = vmul.f32 0.007873535, %v2487_v53  ;;  %vm1302_vm4 = vcmask 257024  }
  0x42   : > { %v755_v6 = vunpack.c.l.bf16 %v747_v4  ;;  %v2256_v7 = vadd.f32 -1.0, %v810_v0  ;;  %v2257_v8 = vadd.f32 -1.0, %v811_v1  ;;  %v812_v19 = vunpack.c.l.bf16 %v804_v17 }
  0x43   : > { %v2244_v11 = vadd.f32 -1.0, %v754_v5  ;;  %v813_v20 = vunpack.c.l.bf16 %v805_v18  ;;  %v753_v57 = vpack.c.bf16 %v745_v55, %v745_v55  ;;  %vm1257_vm5 = vcmask 519168  }
  0x44   : > { %v2245_v12 = vadd.f32 -1.0, %v755_v6  ;;  %v824_v14 = vpack.c.bf16 %v2257_v8, %v2256_v7  ;;  %v2258_v21 = vadd.f32 -1.0, %v812_v19  ;;  %1035 = vmatpush.bf16.msrb.mxu3 %v2442_v58 }
  0x45   : > { %v2259_v22 = vadd.f32 -1.0, %v813_v20  ;;  %v761_v61 = vunpack.c.l.bf16 %v753_v57 }
  0x46   : > { %v770_v13 = vpack.c.bf16 %v2245_v12, %v2244_v11 }
  0x47   : > { %v825_v23 = vpack.c.bf16 %v2259_v22, %v2258_v21  ;;  %v2251_v0 = vadd.f32 -1.0, %v761_v61 }
  0x48   : > { %2264 = vmatmul.msk.bf16.vlgmr.msra.gmra.mxu0 %vm837_vm1, %v770_v13  ;;  %1036 = vmatpush.bf16.msrb.mxu3 %v2441_v62 }
  0x4c   : > { %2266 = vmatmul.msk.bf16.gmra.mxu1 %vm837_vm1, %v772_v30 }
  0x5c   : > { %2268 = vmatmul.msk.bf16.vlgmr.msrb.gmra.mxu1 %vm837_vm1, %v822_v42 }
  0x6c   : > { %2269 = vmatmul.msk.bf16.gmra.mxu1 %vm837_vm1, %v823_v54  ;;  %v744_v54 = vmul.f32 0.007873535, %v2486_v52 }
  0x6e   : > { %v752_v56 = vpack.c.bf16 %v744_v54, %v744_v54 }
  0x70   : > { %v760_v60 = vunpack.c.l.bf16 %v752_v56 }
  0x72   : > { %v2250_v63 = vadd.f32 -1.0, %v760_v60 }
  0x74   : > { %v773_v1 = vpack.c.bf16 %v2251_v0, %v2250_v63 }
  0x76   : > { %2267 = vmatmul.msk.bf16.vlgmr.msra.gmra.mxu3 %vm837_vm1, %v773_v1 }
  0x7c   : > { %2270 = vmatmul.msk.bf16.gmra.mxu1 %vm837_vm1, %v824_v14 }
  0x8c   : > { %2271 = vmatmul.msk.bf16.gmra.mxu1 %vm837_vm1, %v825_v23 }
  0xb9   : > { %v868_v24 = vpop.f32.mrf.mxu1 }
  0xba   : > { %v869_v26 = vadd.f32 %v2990_v25, %v868_v24 }
  0xbc   : > { %v885_v28 = vpack.c.bf16 %v869_v26, %v869_v26 }
  0xbe   : > { %v2994_v31 = vunpack.c.l.b16 %v885_v28 }
  0xc1   : > { %v870_v27 = vpop.f32.mrf.mxu1 }
  0xc2   : > { %v871_v29 = vadd.f32 %v2990_v25, %v870_v27 }
  0xc4   : > { %v886_v30 = vpack.c.bf16 %v871_v29, %v871_v29 }
  0xc5   : > { %v863_v13 = vpop.f32.mrf.mxu0 }
  0xc6   : > { %v2996_v32 = vunpack.c.l.b16 %v886_v30  ;;  %v864_v20 = vadd.f32 %v2990_v25, %v863_v13 }
  0xc8   : > { %v945_v33 = vpack.c.b16 %v2996_v32, %v2994_v31  ;;  %v883_v22 = vpack.c.bf16 %v864_v20, %v864_v20 }
  0xc9   : > { %v873_v34 = vpop.f32.mrf.mxu1 }
  0xca   : > { %v874_v35 = vadd.f32 %v2990_v25, %v873_v34  ;;  %v940_v26 = vunpack.c.l.b16 %v883_v22 }
  0xcc   : > { %v887_v37 = vpack.c.bf16 %v874_v35, %v874_v35 }
  0xcd   : > { %v865_v18 = vpop.f32.mrf.mxu0 }
  0xce   : > { %v3002_v40 = vunpack.c.l.b16 %v887_v37  ;;  %v866_v21 = vadd.f32 %v2990_v25, %v865_v18 }
  0xd0   : > { %v884_v23 = vpack.c.bf16 %v866_v21, %v866_v21 }
  0xd1   : > { %v875_v36 = vpop.f32.mrf.mxu1 }
  0xd2   : > { %v876_v38 = vadd.f32 %v2990_v25, %v875_v36  ;;  %v941_v27 = vunpack.c.l.b16 %v884_v23 }
  0xd4   : > { %v888_v39 = vpack.c.bf16 %v876_v38, %v876_v38  ;;  %v944_v28 = vpack.c.b16 %v941_v27, %v940_v26 }
  0xd6   : > { %v3004_v41 = vunpack.c.l.b16 %v888_v39 }
  0xd8   : > { %v1060_v42 = vpack.c.b16 %v3004_v41, %v3002_v40  ;;  %v2450_v40 = vld [vmem:[%s3393_s9 + $0x8] sm:$0xff]  ;;  %v2447_v41 = vld [vmem:[%s3453_s27 + $0x10] sm:$0xff] }
  0xd9   : > { %v912_v43 = vpop.f32.mrf.mxu1  ;;  %1200 = vmatpush.bf16.msrb.mxu0 %v2450_v40 }
  0xda   : > { %v913_v45 = vadd.f32 %v2990_v25, %v912_v43 }
  0xe1   : > { %v914_v44 = vpop.f32.mrf.mxu1 }
  0xe2   : > { %v915_v46 = vadd.f32 %v2990_v25, %v914_v44 }
  0xe4   : > { %v932_v47 = vpack.c.bf16 %v915_v46, %v913_v45 }
  0xe6   : > { %v954_v24 = vsel %vm946_vm2, %v932_v47, 0  ;;  %v2448_v47 = vld [vmem:[%s3453_s27 + $0x18] sm:$0xff] }
  0xe9   : > { %v917_v49 = vpop.f32.mrf.mxu1 }
  0xea   : > { %v918_v16 = vadd.f32 %v2990_v25, %v917_v49 }
  0xf1   : > { %v919_v59 = vpop.f32.mrf.mxu1 }
  0xf2   : > { %v920_v14 = vadd.f32 %v2990_v25, %v919_v59 }
  0xf4   : > { %v933_v17 = vpack.c.bf16 %v920_v14, %v918_v16  ;;  %v2612_v16 = vld [vmem:[%s3454_s7] ss:$0 sm:$0xff] }
  0xf6   : > { %v957_v19 = vsel %vm946_vm2, %v933_v17, 0 }
  0xf9   : > { %v922_v2 = vpop.f32.mrf.mxu1  ;;  %v878_v38 = vpop.f32.mrf.mxu3 }
  0xfa   : > { %v923_v11 = vadd.f32 %v2990_v25, %v922_v2  ;;  %v879_v31 = vadd.f32 %v2990_v25, %v878_v38 }
 0x101   : > { %v924_v3 = vpop.f32.mrf.mxu1  ;;  %v880_v39 = vpop.f32.mrf.mxu3 }
 0x102   : > { %v925_v9 = vadd.f32 %v2990_v25, %v924_v3  ;;  %v881_v32 = vadd.f32 %v2990_v25, %v880_v39 }
 0x104   : > { %v934_v12 = vpack.c.bf16 %v925_v9, %v923_v11  ;;  %v890_v43 = vpack.c.bf16 %v881_v32, %v881_v32 }
 0x106   : > { %v960_v15 = vsel %vm946_vm2, %v934_v12, 0  ;;  %v1059_v45 = vunpack.c.l.b16 %v890_v43 }
 0x109   : > { %v927_v4 = vpop.f32.mrf.mxu1 }
 0x10a   : > { %v928_v6 = vadd.f32 %v2990_v25, %v927_v4 }
 0x111   : > { %v929_v5 = vpop.f32.mrf.mxu1 }
 0x112   : > { %v930_v7 = vadd.f32 %v2990_v25, %v929_v5  ;;  %v2449_v25 = vld [vmem:[%s3393_s9] sm:$0xff] }
 0x113   : > { %1201 = vmatpush.bf16.msrb.mxu0 %v2449_v25 }
 0x114   : > { %v935_v8 = vpack.c.bf16 %v930_v7, %v928_v6 }
 0x116   : > { %v963_v10 = vsel %vm946_vm2, %v935_v8, 0 }
 0x117   : > { %969 = vmatpush.bf16.xpose.msra.mxu2 %v963_v10  ;;  %1072 = vmatpush.bf16.xpose.msra.mxu3 %v963_v10 }
 0x11f   : > { %970 = vmatpush.bf16.xpose.msra.mxu2 %v960_v15  ;;  %1073 = vmatpush.bf16.xpose.msra.mxu3 %v960_v15 }
 0x127   : > { %971 = vmatpush.bf16.xpose.msra.mxu2 %v957_v19  ;;  %1074 = vmatpush.bf16.xpose.msra.mxu3 %v957_v19 }
 0x12f   : > { %972 = vmatpush.bf16.xpose.msra.mxu2 %v954_v24  ;;  %1075 = vmatpush.bf16.xpose.msra.mxu3 %v954_v24 }
 0x136   : > { %2272 = vmatmul.msk.bf16.vlgmr.msra.gmra.mxu2 %vm946_vm2, %v944_v28 }
 0x137   : > { %1135 = vmatpush.bf16.msrb.mxu2 %v2448_v47 }
 0x13b   : > { %1136 = vmatpush.bf16.msrb.mxu2 %v2447_v41 }
 0x146   : > { %2273 = vmatmul.msk.bf16.gmra.mxu2 %vm946_vm2, %v945_v33  ;;  %v889_v33 = vpack.c.bf16 %v879_v31, %v879_v31 }
 0x148   : > { %v1058_v44 = vunpack.c.l.b16 %v889_v33 }
 0x14a   : > { %v1061_v46 = vpack.c.b16 %v1059_v45, %v1058_v44 }
 0x1b9   : > { %v974_v29 = vpop.f32.mrf.mxu2 }
 0x1c1   : > { %v976_v30 = vpop.f32.mrf.mxu2 }
 0x1c2   : > { %v984_v34 = vpack.c.bf16 %v976_v30, %v974_v29 }
 0x1c4   : > { %2290 = vmatmul.msk.bf16.vlgmr.msrb.gmra.mxu3 %vm1022_vm3, %v984_v34 }
 0x1c9   : > { %v979_v35 = vpop.f32.mrf.mxu2 }
 0x1d1   : > { %v981_v36 = vpop.f32.mrf.mxu2 }
 0x1d2   : > { %v985_v37 = vpack.c.bf16 %v981_v36, %v979_v35 }
 0x1d4   : > { %2291 = vmatmul.msk.bf16.gmra.mxu3 %vm1022_vm3, %v985_v37 }
 0x1e4   : > { %2292 = vmatmul.msk.bf16.vlgmr.msra.gmra.mxu3 %vm946_vm2, %v1060_v42  ;;  %v2446_v42 = vld [vmem:[%s3453_s27 + $0x8] sm:$0xff] }
 0x1e5   : > { %1137 = vmatpush.bf16.msrb.mxu2 %v2446_v42 }
 0x1e9   : > { %1138 = vmatpush.bf16.msrb.mxu2 %v2445_v50 }
 0x1f4   : > { %2293 = vmatmul.msk.bf16.gmra.mxu3 %vm946_vm2, %v1061_v46 }
 0x247   : > { %v1038_v49 = vpop.f32.mrf.mxu3 }
 0x248   : > { %v1039_v51 = vadd.f32 %v2611_v48, %v1038_v49 }
 0x24a   : > { %1048 = vst.msk [vmem:[#allocation2] sm:$0xff] %vm946_vm2, %v1039_v51 }
 0x24f   : > { %v1040_v52 = vpop.f32.mrf.mxu3 }
 0x250   : > { %v1041_v53 = vadd.f32 %v2611_v48, %v1040_v52 }
 0x251   : > { %v1154_v56 = vld [vmem:[#allocation2] sm:$0xff] }
 0x252   : > { %1049 = vst.msk [vmem:[#allocation2 + $0x8] sm:$0xff] %vm946_vm2, %v1041_v53 }
 0x257   : > { %v1043_v54 = vpop.f32.mrf.mxu3 }
 0x258   : > { %v1044_v55 = vadd.f32 %v2611_v48, %v1043_v54 }
 0x259   : > { %v1155_v57 = vld [vmem:[#allocation2 + $0x8] sm:$0xff] }
 0x25a   : > { %1050 = vst.msk [vmem:[#allocation2 + $0x10] sm:$0xff] %vm946_vm2, %v1044_v55  ;;  %v1162_v58 = vpack.c.bf16 %v1155_v57, %v1154_v56 }
 0x25c   : > { %2320 = vmatmul.msk.bf16.vlgmr.msrb.gmra.mxu0 %vm946_vm2, %v1162_v58 }
 0x25f   : > { %v1045_v59 = vpop.f32.mrf.mxu3 }
 0x260   : > { %v1046_v60 = vadd.f32 %v2611_v48, %v1045_v59 }
 0x261   : > { %v1156_v62 = vld [vmem:[#allocation2 + $0x10] sm:$0xff] }
 0x262   : > { %1051 = vst.msk [vmem:[#allocation2 + $0x18] sm:$0xff] %vm946_vm2, %v1046_v60 }
 0x267   : > { %v1077_v61 = vpop.f32.mrf.mxu3 }
 0x269   : > { %v1157_v63 = vld [vmem:[#allocation2 + $0x18] sm:$0xff] }
 0x26a   : > { %v1163_v0 = vpack.c.bf16 %v1157_v63, %v1156_v62 }
 0x26c   : > { %2321 = vmatmul.msk.bf16.gmra.mxu0 %vm946_vm2, %v1163_v0 }
 0x26f   : > { %v1079_v1 = vpop.f32.mrf.mxu3 }
 0x270   : > { %v1087_v2 = vpack.c.bf16 %v1079_v1, %v1077_v61 }
 0x272   : > { %2310 = vmatmul.msk.bf16.vlgmr.msrb.gmra.mxu2 %vm1022_vm3, %v1087_v2 }
 0x277   : > { %v1082_v3 = vpop.f32.mrf.mxu3 }
 0x27f   : > { %v1084_v4 = vpop.f32.mrf.mxu3 }
 0x280   : > { %v1088_v5 = vpack.c.bf16 %v1084_v4, %v1082_v3 }
 0x282   : > { %2311 = vmatmul.msk.bf16.gmra.mxu2 %vm1022_vm3, %v1088_v5 }
 0x2d9   : > { %v1203_v6 = vpop.f32.mrf.mxu0 }
 0x2da   : > { %v1262_v7 = vpack.c.bf16 %v1203_v6, %v1203_v6 }
 0x2dc   : > { %1278 = vrot.lane.b32.xlu1 %v1262_v7, %s2759_s25 }
 0x2e1   : > { %v1205_v8 = vpop.f32.mrf.mxu0 }
 0x2e2   : > { %v1263_v9 = vpack.c.bf16 %v1205_v8, %v1205_v8  ;;  %v1223_v10 = vpack.c.bf16 %v1205_v8, %v1203_v6 }
 0x2e4   : > { %1280 = vrot.lane.b32.xlu1 %v1263_v9, %s2759_s25  ;;  %1227 = vxpose.xlu0.c.b16.start [1/4] (short) (narrow) %v1223_v10, 32 }
 0x2e9   : > { %v1208_v11 = vpop.f32.mrf.mxu0 }
 0x2ea   : > { %v1264_v12 = vpack.c.bf16 %v1208_v11, %v1208_v11 }
 0x2ec   : > { %1282 = vrot.lane.b32.xlu2 %v1264_v12, %s2759_s25 }
 0x2f1   : > { %v1210_v13 = vpop.f32.mrf.mxu0 }
 0x2f2   : > { %v1265_v14 = vpack.c.bf16 %v1210_v13, %v1210_v13  ;;  %v1224_v15 = vpack.c.bf16 %v1210_v13, %v1208_v11 }
 0x2f4   : > { %1284 = vrot.lane.b32.xlu2 %v1265_v14, %s2759_s25  ;;  %1228 = vxpose.xlu0.c.b16.cont [2/4] (short) (narrow) %v1224_v15, 32 }
 0x2f5   : > { %v1140_v17 = vpop.f32.mrf.mxu2 }
 0x2f6   : > { %v1141_v18 = vadd.f32 %v2612_v16, %v1140_v17 }
 0x2f8   : > { %1150 = vst.msk [vmem:[#allocation2 + $0x20] sm:$0xff] %vm946_vm2, %v1141_v18 }
 0x2fd   : > { %v1142_v19 = vpop.f32.mrf.mxu2 }
 0x2fe   : > { %v1143_v20 = vadd.f32 %v2612_v16, %v1142_v19 }
 0x2ff   : > { %v1158_v23 = vld [vmem:[#allocation2 + $0x20] sm:$0xff] }
 0x300   : > { %1151 = vst.msk [vmem:[#allocation2 + $0x28] sm:$0xff] %vm946_vm2, %v1143_v20 }
 0x305   : > { %v1145_v21 = vpop.f32.mrf.mxu2 }
 0x306   : > { %v1146_v22 = vadd.f32 %v2612_v16, %v1145_v21 }
 0x307   : > { %v1159_v24 = vld [vmem:[#allocation2 + $0x28] sm:$0xff] }
 0x308   : > { %1152 = vst.msk [vmem:[#allocation2 + $0x30] sm:$0xff] %vm946_vm2, %v1146_v22  ;;  %v1164_v26 = vpack.c.bf16 %v1159_v24, %v1158_v23 }
 0x30a   : > { %2322 = vmatmul.msk.bf16.gmra.mxu0 %vm946_vm2, %v1164_v26 }
 0x30d   : > { %v1147_v27 = vpop.f32.mrf.mxu2 }
 0x30e   : > { %v1148_v28 = vadd.f32 %v2612_v16, %v1147_v27 }
 0x30f   : > { %v1160_v29 = vld [vmem:[#allocation2 + $0x30] sm:$0xff] }
 0x310   : > { %1153 = vst.msk [vmem:[#allocation2 + $0x38] sm:$0xff] %vm946_vm2, %v1148_v28 }
 0x317   : > { %v1161_v30 = vld [vmem:[#allocation2 + $0x38] sm:$0xff] }
 0x318   : > { %v1165_v34 = vpack.c.bf16 %v1161_v30, %v1160_v29 }
 0x31a   : > { %2323 = vmatmul.msk.bf16.gmra.mxu0 %vm946_vm2, %v1165_v34 }
 0x346   : > { %v1283_v35 = vpop.permute.xlu2 %1282 }
 0x347   : > { %1305 = vst.msk [vmem:[#allocation4 + $0x8] sm:$0xf] %vm1302_vm4, %v1283_v35 }
 0x34e   : > { %v1279_v36 = vpop.permute.xlu1 %1278  ;;  %v1285_v37 = vpop.permute.xlu2 %1284 }
 0x34f   : > { %1303 = vst.msk [vmem:[#allocation4] sm:$0xf] %vm1302_vm4, %v1279_v36 }
 0x350   : > { %1306 = vst.msk [vmem:[#allocation4 + $0xc] sm:$0xf] %vm1302_vm4, %v1285_v37 }
 0x356   : > { %v1281_v38 = vpop.permute.xlu1 %1280 }
 0x357   : > { %1304 = vst.msk [vmem:[#allocation4 + $0x4] sm:$0xf] %vm1302_vm4, %v1281_v38 }
 0x387   : > { %v1213_v39 = vpop.f32.mrf.mxu0 }
 0x388   : > { %v1266_v31 = vpack.c.bf16 %v1213_v39, %v1213_v39 }
 0x38a   : > { %1286 = vrot.lane.b32.xlu1 %v1266_v31, %s2759_s25 }
 0x38f   : > { %v1215_v32 = vpop.f32.mrf.mxu0 }
 0x390   : > { %v1267_v33 = vpack.c.bf16 %v1215_v32, %v1215_v32  ;;  %v1225_v43 = vpack.c.bf16 %v1215_v32, %v1213_v39 }
 0x392   : > { %1288 = vrot.lane.b32.xlu2 %v1267_v33, %s2759_s25  ;;  %1229 = vxpose.xlu0.c.b16.cont [3/4] (short) (narrow) %v1225_v43, 32 }
 0x397   : > { %v1218_v44 = vpop.f32.mrf.mxu0 }
 0x398   : > { %v1268_v45 = vpack.c.bf16 %v1218_v44, %v1218_v44 }
 0x39a   : > { %1290 = vrot.lane.b32.xlu1 %v1268_v45, %s2759_s25 }
 0x39f   : > { %v1220_v46 = vpop.f32.mrf.mxu0 }
 0x3a0   : > { %v1226_v47 = vpack.c.bf16 %v1220_v46, %v1218_v44  ;;  %v1269_v40 = vpack.c.bf16 %v1220_v46, %v1220_v46 }
 0x3a2   : > { %1292 = vrot.lane.b32.xlu2 %v1269_v40, %s2759_s25  ;;  %1230 = vxpose.xlu0.c.b16.end [4/4] (short) (narrow) %v1226_v47, 32 }
 0x3ec   : > { %v1289_v25 = vpop.permute.xlu2 %1288 }
 0x3ed   : > { %1308 = vst.msk [vmem:[#allocation4 + $0x14] sm:$0xf] %vm1302_vm4, %v1289_v25 }
 0x3fc   : > { %v1287_v41 = vpop.permute.xlu1 %1286  ;;  %v1293_v42 = vpop.permute.xlu2 %1292 }
 0x3fd   : > { %1307 = vst.msk [vmem:[#allocation4 + $0x10] sm:$0xf] %vm1302_vm4, %v1287_v41 }
 0x3fe   : > { %1310 = vst.msk [vmem:[#allocation4 + $0x1c] sm:$0xf] %vm1302_vm4, %v1293_v42 }
 0x40c   : > { %v1291_v48 = vpop.permute.xlu1 %1290 }
 0x40d   : > { %1309 = vst.msk [vmem:[#allocation4 + $0x18] sm:$0xf] %vm1302_vm4, %v1291_v48 }
 0x41e   : > { %v1235_v49 = vpop.trf.xlu0 }
 0x41f   : > { %v1245_v50 = vunpack.c.l.b16 %v1235_v49  ;;  %v1246_v51 = vunpack.c.h.b16 %v1235_v49 }
 0x421   : > { %v1249_v52 = vpack.c.b16 %v1245_v50, %v1245_v50  ;;  %v1250_v53 = vpack.c.b16 %v1246_v51, %v1246_v51 }
 0x423   : > { %1258 = vst.msk [vmem:[#allocation3] sm:$0xf] %vm1257_vm5, %v1249_v52 }
 0x424   : > { %1259 = vst.msk [vmem:[#allocation3 + $0x4] sm:$0xf] %vm1257_vm5, %v1250_v53 }
 0x42e   : > { %v1236_v54 = vpop.trf.xlu0 }
 0x42f   : > { %v1247_v55 = vunpack.c.l.b16 %v1236_v54  ;;  %v1248_v56 = vunpack.c.h.b16 %v1236_v54 }
 0x431   : > { %v1251_v57 = vpack.c.b16 %v1247_v55, %v1247_v55  ;;  %v1252_v58 = vpack.c.b16 %v1248_v56, %v1248_v56 }
 0x433   : > { %1260 = vst.msk [vmem:[#allocation3 + $0x8] sm:$0xf] %vm1257_vm5, %v1251_v57 }
 0x434   : > { %1261 = vst.msk [vmem:[#allocation3 + $0xc] sm:$0xf] %vm1257_vm5, %v1252_v58 }
 0x435 PF: > { %s3455_s8 = sld [smem:[#allocation27_spill]]  ;;  %s2324_s1 = sshll.u32 %s2741_s30, 5  ;;  %vm1335_vm6 = vcmask 261120   ;;  %v2453_v4 = vld [vmem:[#allocation3] sm:$0xff]  ;;  %vm1404_vm7 = vcmask 523264   ;;  %v2458_v19 = vld [vmem:[#allocation4 + $0x18] sm:$0xff] }
 0x436   : > { %s1312_s28 = scalar_lea.vmem [#allocation2], %s2324_s1  ;;  %1499 = vmatpush.bf16.msra.mxu2 %v2458_v19  ;;  %v2457_v20 = vld [vmem:[#allocation4 + $0x10] sm:$0xff]  ;;  %v2456_v21 = vld [vmem:[#allocation4 + $0x8] sm:$0xff]  ;;  %v2455_v22 = vld [vmem:[#allocation4] sm:$0xff]  ;;  %s1950_s25 = sshra.s32 %s2324_s1, 3  ;;  %vm1998_vm5 = vcmask 1045504  }
 0x437   : > { %v3113_v62 = vld [vmem:[%s1312_s28] sm:$0xff]  ;;  %v3115_v63 = vld [vmem:[%s1312_s28 + $0x8] sm:$0xff]  ;;  %v3117_v0 = vld [vmem:[%s1312_s28 + $0x10] sm:$0xff]  ;;  %s2401_s2 = sshll.u32 %s1950_s25, 2  ;;  %s3456_s5 = sld [smem:[#allocation23_spill]] }
 0x438   : > { %v3119_v1 = vld [vmem:[%s1312_s28 + $0x18] sm:$0xff]  ;;  %v1317_v2 = vpack.c.bf16 %v3115_v63, %v3113_v62  ;;  %v2460_v55 = vld [vmem:[%s3394_s10 + $0x8] sm:$0xff]  ;;  %v2459_v56 = vld [vmem:[%s3394_s10] sm:$0xff]  ;;  %s3242_s26 = scalar_lea.vmem %s2957_s23, %s2401_s2  ;;  %s3458_s22 = sld [smem:[#allocation28_spill]] }
 0x439   : > { %v1318_v3 = vpack.c.bf16 %v3119_v1, %v3117_v0  ;;  %1548 = vmatpush.bf16.msra.mxu3 %v2460_v55  ;;  %s2433_s3 = sshll.u32 %s2741_s30, 2  ;;  %s2434_s28 = sshll.u32 %s2745_s4, 3 }
 0x43a   : > { %1500 = vmatpush.bf16.msra.mxu2 %v2457_v20  ;;  %s3459_s23 = sld [smem:[#allocation9_spill]]  ;;  %s2135_s1 = sadd.s32 %s2434_s28, %s2433_s3 }
 0x43b   : > { %v2452_v59 = vld [vmem:[%s3455_s8 + $0x8] sm:$0xff]  ;;  %v2451_v60 = vld [vmem:[%s3455_s8] sm:$0xff]  ;;  %s2435_s29 = sshll.u32 %s2135_s1, 2  ;;  %s3460_s2 = sld [smem:[#allocation29_spill]] }
 0x43c   : > { %v2454_v61 = vld [vmem:[#allocation3 + $0x8] sm:$0xff]  ;;  %1348 = vmatpush.bf16.msra.mxu0 %v2452_v59  ;;  %2532 = vmatpush.bf16.msra.mxu1 %v2452_v59 }
 0x43d   : > { %1549 = vmatpush.bf16.msra.mxu3 %v2459_v56 }
 0x43e   : > { %1501 = vmatpush.bf16.msra.mxu2 %v2456_v21 }
 0x440   : > { %1349 = vmatpush.bf16.msra.mxu0 %v2451_v60  ;;  %2533 = vmatpush.bf16.msra.mxu1 %v2451_v60  ;;  %s3462_s30 = sand.u32 1, %s3459_s23  }
 0x441   : > { %s2124_s4 = scalar_lea.sflag [#allocation6], %s3462_s30  ;;  %s2683_s0 = scalar_lea.hbm %s3460_s2, 64 }
 0x442   : > { %1502 = vmatpush.bf16.msra.mxu2 %v2455_v22 }
 0x443   : > { %2333 = vmatmul.msk.bf16.vlgmr.msra.gmra.mxu0 %vm1335_vm6, %v1317_v2  ;;  %2334 = vmatmul.msk.bf16.vlgmr.msra.gmra.mxu1 %vm1335_vm6, %v1318_v3 }
 0x444   : > { %1391 = vmatpush.bf16.msrb.mxu1 %v2454_v61 }
 0x448   : > { %1392 = vmatpush.bf16.msrb.mxu1 %v2453_v4 }
 0x4c0   : > { %v1351_v5 = vpop.f32.mrf.mxu0  ;;  %v1356_v8 = vpop.f32.mrf.mxu1 }
 0x4c8   : > { %v1353_v6 = vpop.f32.mrf.mxu0  ;;  %v1358_v9 = vpop.f32.mrf.mxu1 }
 0x4c9   : > { %v1361_v7 = vpack.c.bf16 %v1353_v6, %v1351_v5  ;;  %v1362_v10 = vpack.c.bf16 %v1358_v9, %v1356_v8 }
 0x4cb   : > { %2343 = vmatmul.msk.bf16.vlgmr.msrb.gmra.mxu1 %vm1335_vm6, %v1361_v7 }
 0x4db   : > { %2344 = vmatmul.msk.bf16.gmra.mxu1 %vm1335_vm6, %v1362_v10 }
 0x548   : > { %v1394_v11 = vpop.f32.mrf.mxu1 }
 0x549   : > { %v1405_v12 = vsel %vm1404_vm7, %v1394_v11, -inf }
 0x54a   : > { %1406 = vmax.xlane.f32.xlu0 %v1405_v12 }
 0x550   : > { %v1396_v13 = vpop.f32.mrf.mxu1 }
 0x551   : > { %v1408_v14 = vsel %vm1404_vm7, %v1396_v13, -inf }
 0x552   : > { %1409 = vmax.xlane.f32.xlu0 %v1408_v14 }
 0x558   : > { %v1399_v15 = vpop.f32.mrf.mxu1 }
 0x559   : > { %v1411_v16 = vsel %vm1404_vm7, %v1399_v15, -inf }
 0x55a   : > { %1412 = vmax.xlane.f32.xlu1 %v1411_v16 }
 0x560   : > { %v1401_v17 = vpop.f32.mrf.mxu1 }
 0x561   : > { %v1414_v18 = vsel %vm1404_vm7, %v1401_v17, -inf }
 0x562   : > { %1415 = vmax.xlane.f32.xlu1 %v1414_v18 }
 0x5bd   : > { %v1407_v23 = vpop.xlane.xlu0 %1406 }
 0x5be   : > { %v1417_v26 = vsub.f32 %v1394_v11, %v1407_v23 }
 0x5c5   : > { %v1410_v24 = vpop.xlane.xlu0 %1409 }
 0x5c6   : > { %v1418_v27 = vsub.f32 %v1396_v13, %v1410_v24 }
 0x5c8   : > { %v1421_v28 = vpack.c.bf16 %v1418_v27, %v1417_v26 }
 0x5ca   : > { %v1423_v29 = vunpack.c.l.bf16 %v1421_v28  ;;  %v1424_v30 = vunpack.c.h.bf16 %v1421_v28 }
 0x5cc   : > { %v1427_v34 = vmul.f32 1.442695, %v1423_v29  ;;  %v1429_v35 = vmul.f32 1.442695, %v1424_v30 }
 0x5cd   : > { %v1413_v36 = vpop.xlane.xlu1 %1412 }
 0x5ce   : > { %2621 = vpow2.f32 %v1427_v34  ;;  %v1419_v31 = vsub.f32 %v1399_v15, %v1413_v36  ;;  %v2760_v36 = vmov 32.0  }
 0x5cf   : > { %2623 = vpow2.f32 %v1429_v35 }
 0x5d4   : > { %v2622_v37 = vpop.eup %2621 }
 0x5d5   : > { %v2624_v38 = vpop.eup %2623  ;;  %v1416_v39 = vpop.xlane.xlu1 %1415 }
 0x5d6   : > { %v1420_v32 = vsub.f32 %v1401_v17, %v1416_v39  ;;  %v1435_v33 = vpack.c.bf16 %v2624_v38, %v2622_v37 }
 0x5d8   : > { %v1422_v43 = vpack.c.bf16 %v1420_v32, %v1419_v31  ;;  %2361 = vmatmul.msk.bf16.vlgmr.msra.gmra.mxu2 %vm1404_vm7, %v1435_v33  ;;  %v1437_v44 = vunpack.c.l.bf16 %v1435_v33  ;;  %v1438_v41 = vunpack.c.h.bf16 %v1435_v33 }
 0x5da   : > { %v1425_v45 = vunpack.c.l.bf16 %v1422_v43  ;;  %v1426_v46 = vunpack.c.h.bf16 %v1422_v43  ;;  %v1441_v47 = vsel %vm1404_vm7, %v1437_v44, 0.0  ;;  %v1444_v42 = vsel %vm1404_vm7, %v1438_v41, 0.0  ;;  %v2461_v41 = vld [vmem:[%s3397_s13] sm:$0xff] }
 0x5db   : > { %1442 = vadd.xlane.f32.xlu2 %v1441_v47  ;;  %v2462_v47 = vld [vmem:[%s3397_s13 + $0x8] sm:$0xff] }
 0x5dc   : > { %v1431_v40 = vmul.f32 1.442695, %v1425_v45  ;;  %v1433_v25 = vmul.f32 1.442695, %v1426_v46  ;;  %1718 = vmatpush.bf16.msrb.mxu0 %v2462_v47 }
 0x5de   : > { %2625 = vpow2.f32 %v1431_v40 }
 0x5df   : > { %2627 = vpow2.f32 %v1433_v25 }
 0x5e0   : > { %1719 = vmatpush.bf16.msrb.mxu0 %v2461_v41 }
 0x5e3   : > { %1445 = vadd.xlane.f32.xlu2 %v1444_v42 }
 0x5e4   : > { %v2626_v48 = vpop.eup %2625 }
 0x5e5   : > { %v2628_v49 = vpop.eup %2627 }
 0x5e6   : > { %v1436_v50 = vpack.c.bf16 %v2628_v49, %v2626_v48 }
 0x5e8   : > { %2362 = vmatmul.msk.bf16.gmra.mxu2 %vm1404_vm7, %v1436_v50  ;;  %v1440_v51 = vunpack.c.h.bf16 %v1436_v50  ;;  %v1439_v52 = vunpack.c.l.bf16 %v1436_v50 }
 0x5ea   : > { %v1450_v53 = vsel %vm1404_vm7, %v1440_v51, 0.0  ;;  %v1447_v54 = vsel %vm1404_vm7, %v1439_v52, 0.0 }
 0x5eb   : > { %1451 = vadd.xlane.f32.xlu1 %v1450_v53  ;;  %1448 = vadd.xlane.f32.xlu0 %v1447_v54 }
 0x64e   : > { %v1443_v57 = vpop.xlane.xlu2 %1442 }
 0x64f   : > { %2629 = vrcp.f32 %v1443_v57 }
 0x655   : > { %v2630_v60 = vpop.eup %2629 }
 0x656   : > { %v1446_v58 = vpop.xlane.xlu2 %1445 }
 0x657   : > { %2631 = vrcp.f32 %v1446_v58 }
 0x65b   : > { %v1504_v59 = vpop.f32.mrf.mxu2 }
 0x65c   : > { %v1514_v3 = vmul.f32 %v2630_v60, %v1504_v59 }
 0x65d   : > { %v2632_v61 = vpop.eup %2631 }
 0x65e   : > { %v1452_v6 = vpop.xlane.xlu1 %1451  ;;  %v1449_v7 = vpop.xlane.xlu0 %1448 }
 0x65f   : > { %2633 = vrcp.f32 %v1452_v6 }
 0x660   : > { %2635 = vrcp.f32 %v1449_v7 }
 0x661   : > { %2637 = vrcp.f32 %v2760_v36 }
 0x663   : > { %v1506_v2 = vpop.f32.mrf.mxu2 }
 0x664   : > { %v1515_v4 = vmul.f32 %v2632_v61, %v1506_v2 }
 0x665   : > { %v2634_v9 = vpop.eup %2633 }
 0x666   : > { %v1518_v5 = vpack.c.bf16 %v1515_v4, %v1514_v3  ;;  %v2636_v10 = vpop.eup %2635 }
 0x667   : > { %v2638_v37 = vpop.eup %2637 }
 0x668   : > { %2371 = vmatmul.msk.bf16.vlgmr.msra.gmra.mxu3 %vm1335_vm6, %v1518_v5  ;;  %v1578_v38 = vmul.f32 32.0, %v2638_v37  ;;  %vm1582_vm8 = vweird.f32 %v2638_v37 }
 0x66a   : > { %v1579_v39 = vsub.f32 1.0, %v1578_v38 }
 0x66b   : > { %v1509_v8 = vpop.f32.mrf.mxu2 }
 0x66c   : > { %v1516_v12 = vmul.f32 %v2636_v10, %v1509_v8  ;;  %v1580_v31 = vmul.f32 %v2638_v37, %v1579_v39 }
 0x66e   : > { %v1581_v32 = vadd.f32 %v2638_v37, %v1580_v31 }
 0x673   : > { %v1511_v11 = vpop.f32.mrf.mxu2 }
 0x674   : > { %v1517_v13 = vmul.f32 %v2634_v9, %v1511_v11 }
 0x676   : > { %v1519_v14 = vpack.c.bf16 %v1517_v13, %v1516_v12 }
 0x678   : > { %2372 = vmatmul.msk.bf16.gmra.mxu3 %vm1335_vm6, %v1519_v14 }
 0x6eb   : > { %v1551_v15 = vpop.f32.mrf.mxu3 }
 0x6ec   : > { %v3148_v16 = vadd.f32 %v1551_v15, %v3113_v62 }
 0x6ee   : > { %v1565_v17 = vsel %vm1335_vm6, %v3148_v16, 0.0  ;;  %v1588_v18 = vmul.f32 %v3148_v16, %v3148_v16 }
 0x6ef   : > { %1566 = vadd.xlane.f32.xlu2 %v1565_v17 }
 0x6f0   : > { %v1592_v19 = vsel %vm1335_vm6, %v1588_v18, 0.0 }
 0x6f1   : > { %1593 = vadd.xlane.f32.xlu1 %v1592_v19 }
 0x6f3   : > { %v1553_v20 = vpop.f32.mrf.mxu3 }
 0x6f4   : > { %v3156_v21 = vadd.f32 %v1553_v20, %v3115_v63 }
 0x6f6   : > { %v1568_v22 = vsel %vm1335_vm6, %v3156_v21, 0.0  ;;  %v1589_v62 = vmul.f32 %v3156_v21, %v3156_v21 }
 0x6f7   : > { %1569 = vadd.xlane.f32.xlu0 %v1568_v22 }
 0x6f8   : > { %v1595_v23 = vsel %vm1335_vm6, %v1589_v62, 0.0 }
 0x6f9   : > { %1596 = vadd.xlane.f32.xlu2 %v1595_v23 }
 0x6fb   : > { %v1556_v24 = vpop.f32.mrf.mxu3 }
 0x6fc   : > { %v3164_v26 = vadd.f32 %v1556_v24, %v3117_v0  ;;  %v2613_v24 = vld [vmem:[%s3395_s11] ss:$0 sm:$0xff] }
 0x6fe   : > { %v1571_v27 = vsel %vm1335_vm6, %v3164_v26, 0.0  ;;  %v1590_v63 = vmul.f32 %v3164_v26, %v3164_v26 }
 0x6ff   : > { %1572 = vadd.xlane.f32.xlu0 %v1571_v27 }
 0x700   : > { %v1598_v28 = vsel %vm1335_vm6, %v1590_v63, 0.0 }
 0x701   : > { %1599 = vadd.xlane.f32.xlu2 %v1598_v28 }
 0x703   : > { %v1558_v29 = vpop.f32.mrf.mxu3 }
 0x704   : > { %v3172_v30 = vadd.f32 %v1558_v29, %v3119_v1  ;;  %v3179_v1 = vsel %vm1582_vm8, %v2638_v37, %v1581_v32  ;;  %vm1991_vm8 = vcmask 97280  }
 0x706   : > { %v1574_v34 = vsel %vm1335_vm6, %v3172_v30, 0.0  ;;  %v1591_v0 = vmul.f32 %v3172_v30, %v3172_v30 }
 0x707   : > { %1575 = vadd.xlane.f32.xlu1 %v1574_v34 }
 0x708   : > { %v1601_v35 = vsel %vm1335_vm6, %v1591_v0, 0.0 }
 0x709   : > { %1602 = vadd.xlane.f32.xlu0 %v1601_v35  ;;  %v2614_v35 = vld [vmem:[%s3396_s12] ss:$0 sm:$0xff] }
 0x762   : > { %v1567_v33 = vpop.xlane.xlu2 %1566 }
 0x763   : > { %v1584_v43 = vmul.f32 %v3179_v1, %v1567_v33 }
 0x764   : > { %v1594_v44 = vpop.xlane.xlu1 %1593 }
 0x765   : > { %v1612_v45 = vmul.f32 %v1584_v43, %v1584_v43  ;;  %v1604_v46 = vmul.f32 %v1594_v44, %v3179_v1  ;;  %v1608_v18 = vsub.f32 %v3148_v16, %v1584_v43 }
 0x767   : > { %v1616_v40 = vsub.f32 %v1604_v46, %v1612_v45 }
 0x769   : > { %v1620_v25 = vadd.f32 1e-06, %v1616_v40 }
 0x76a   : > { %v1570_v42 = vpop.xlane.xlu0 %1569 }
 0x76b   : > { %2639 = vrsqrt.f32 %v1620_v25  ;;  %v1585_v48 = vmul.f32 %v3179_v1, %v1570_v42  ;;  %vm1630_vm10 = vweird.f32 %v1620_v25 }
 0x76c   : > { %v1597_v49 = vpop.xlane.xlu2 %1596 }
 0x76d   : > { %v1613_v50 = vmul.f32 %v1585_v48, %v1585_v48  ;;  %v1605_v51 = vmul.f32 %v1597_v49, %v3179_v1  ;;  %v1609_v28 = vsub.f32 %v3156_v21, %v1585_v48 }
 0x76f   : > { %v1617_v52 = vsub.f32 %v1605_v51, %v1613_v50 }
 0x771   : > { %v2640_v53 = vpop.eup %2639  ;;  %v1621_v54 = vadd.f32 1e-06, %v1617_v52 }
 0x772   : > { %v1625_v55 = vmul.f32 %v2640_v53, %v1620_v25  ;;  %v1573_v56 = vpop.xlane.xlu0 %1572  ;;  %vm1631_vm9 = vweird.f32 %v2640_v53 }
 0x773   : > { %2641 = vrsqrt.f32 %v1621_v54  ;;  %v3192_v57 = vmul.f32 %v3179_v1, %v1573_v56  ;;  %vm1632_vm11 = vmor %vm1630_vm10, %vm1631_vm9  ;;  %vm1640_vm13 = vweird.f32 %v1621_v54  ;;  %v2615_v56 = vld [vmem:[%s3398_s14] ss:$0 sm:$0xff] }
 0x774   : > { %v1626_v58 = vmul.f32 %v2640_v53, %v1625_v55  ;;  %v1600_v59 = vpop.xlane.xlu2 %1599  ;;  %v2464_v55 = vld [vmem:[%s3399_s15 + $0x8] sm:$0xff] }
 0x775   : > { %v1614_v60 = vmul.f32 %v3192_v57, %v3192_v57  ;;  %v1606_v61 = vmul.f32 %v1600_v59, %v3179_v1  ;;  %v1610_v47 = vsub.f32 %v3164_v26, %v3192_v57  ;;  %v2466_v26 = vld [vmem:[%s3399_s15 + $0x18] sm:$0xff] }
 0x776   : > { %v1627_v2 = vmul.f32 0.5, %v1626_v58  ;;  %1811 = vmatpush.bf16.msra.mxu1 %v2466_v26  ;;  %v2463_v58 = vld [vmem:[%s3399_s15] sm:$0xff] }
 0x777   : > { %v1618_v3 = vsub.f32 %v1606_v61, %v1614_v60 }
 0x778   : > { %v1628_v4 = vsub.f32 1.5, %v1627_v2 }
 0x779   : > { %v2642_v5 = vpop.eup %2641  ;;  %v1622_v6 = vadd.f32 1e-06, %v1618_v3 }
 0x77a   : > { %v1629_v7 = vmul.f32 %v2640_v53, %v1628_v4  ;;  %v1635_v8 = vmul.f32 %v2642_v5, %v1621_v54  ;;  %v1576_v9 = vpop.xlane.xlu1 %1575  ;;  %vm1641_vm12 = vweird.f32 %v2642_v5 }
 0x77b   : > { %2643 = vrsqrt.f32 %v1622_v6  ;;  %v1587_v10 = vmul.f32 %v3179_v1, %v1576_v9  ;;  %vm1642_vm14 = vmor %vm1640_vm13, %vm1641_vm12  ;;  %vm1650_vm0 = vweird.f32 %v1622_v6 }
 0x77c   : > { %v1636_v11 = vmul.f32 %v2642_v5, %v1635_v8  ;;  %v1603_v12 = vpop.xlane.xlu0 %1602  ;;  %v1633_v15 = vsel %vm1632_vm11, %v2640_v53, %v1629_v7 }
 0x77d   : > { %v1615_v13 = vmul.f32 %v1587_v10, %v1587_v10  ;;  %v1607_v14 = vmul.f32 %v1603_v12, %v3179_v1  ;;  %v1664_v62 = vmul.f32 %v1633_v15, %v1608_v18  ;;  %v1611_v42 = vsub.f32 %v3172_v30, %v1587_v10  ;;  %v2465_v30 = vld [vmem:[%s3399_s15 + $0x10] sm:$0xff]  ;;  %v2408_v15 = vld [vmem:[%s3456_s5] sm:$0xf] }
 0x77e   : > { %v1637_v17 = vmul.f32 0.5, %v1636_v11  ;;  %1812 = vmatpush.bf16.msra.mxu1 %v2465_v30 }
 0x77f   : > { %v1619_v19 = vsub.f32 %v1607_v14, %v1615_v13  ;;  %v1672_v0 = vmul.f32 %v2613_v24, %v1664_v62 }
 0x780   : > { %v1638_v20 = vsub.f32 1.5, %v1637_v17  ;;  %v2467_v17 = vld [vmem:[%s3456_s5] sm:$0x30] }
 0x781   : > { %v2644_v22 = vpop.eup %2643  ;;  %v1623_v23 = vadd.f32 1e-06, %v1619_v19  ;;  %v3207_v31 = vadd.f32 %v2614_v35, %v1672_v0 }
 0x782   : > { %v1639_v27 = vmul.f32 %v2642_v5, %v1638_v20  ;;  %v1645_v63 = vmul.f32 %v2644_v22, %v1622_v6  ;;  %vm1651_vm15 = vweird.f32 %v2644_v22  ;;  %1813 = vmatpush.bf16.msra.mxu1 %v2464_v55  ;;  %v2409_v20 = vor.u32 %v2467_v17, %v2408_v15 }
 0x783   : > { %2645 = vrsqrt.f32 %v1623_v23  ;;  %vm1652_vm1 = vmor %vm1650_vm0, %vm1651_vm15  ;;  %vm1660_vm3 = vweird.f32 %v1623_v23 }
 0x784   : > { %v1643_v29 = vsel %vm1642_vm14, %v2642_v5, %v1639_v27  ;;  %v1646_v34 = vmul.f32 %v2644_v22, %v1645_v63  ;;  %v2000_v27 = vsel %vm1998_vm5, %v2409_v20, 0 }
 0x785   : > { %v1665_v16 = vmul.f32 %v1643_v29, %v1609_v28  ;;  %2009 = vmatpush.bf16.msrb.mxu3 %v2000_v27 }
 0x786   : > { %v1647_v36 = vmul.f32 0.5, %v1646_v34  ;;  %1814 = vmatpush.bf16.msra.mxu1 %v2463_v58 }
 0x787   : > { %v1673_v37 = vmul.f32 %v2613_v24, %v1665_v16 }
 0x788   : > { %v1648_v38 = vsub.f32 1.5, %v1647_v36 }
 0x789   : > { %v2646_v39 = vpop.eup %2645  ;;  %v3209_v32 = vadd.f32 %v2614_v35, %v1673_v37 }
 0x78a   : > { %v1649_v33 = vmul.f32 %v2644_v22, %v1648_v38  ;;  %v1655_v21 = vmul.f32 %v2646_v39, %v1623_v23  ;;  %vm1661_vm2 = vweird.f32 %v2646_v39 }
 0x78b   : > { %v1684_v43 = vpack.c.bf16 %v3209_v32, %v3207_v31  ;;  %vm1662_vm4 = vmor %vm1660_vm3, %vm1661_vm2 }
 0x78c   : > { %v1656_v44 = vmul.f32 %v2646_v39, %v1655_v21  ;;  %v1653_v45 = vsel %vm1652_vm1, %v2644_v22, %v1649_v33  ;;  %v2505_v22 = vld [vmem:[%s3242_s26] sm:$0xff]  }
 0x78d   : > { %2381 = vmatmul.msk.bf16.vlgmr.msrb.gmra.mxu0 %vm1335_vm6, %v1684_v43  ;;  %v1666_v25 = vmul.f32 %v1653_v45, %v1610_v47  ;;  %v2506_v62 = vunpack.c.l.bf16 %v2505_v22  ;;  %v2507_v23 = vunpack.c.h.bf16 %v2505_v22 }
 0x78e   : > { %v1657_v46 = vmul.f32 0.5, %v1656_v44 }
 0x78f   : > { %v1674_v50 = vmul.f32 %v2613_v24, %v1666_v25  ;;  %v1962_v29 = vmul.f32 0.007873535, %v2506_v62  ;;  %v1963_v34 = vmul.f32 0.007873535, %v2507_v23 }
 0x790   : > { %v1658_v40 = vsub.f32 1.5, %v1657_v46 }
 0x791   : > { %v3217_v52 = vadd.f32 %v2614_v35, %v1674_v50  ;;  %v1967_v36 = vpack.c.bf16 %v1963_v34, %v1963_v34 }
 0x792   : > { %v1659_v41 = vmul.f32 %v2646_v39, %v1658_v40 }
 0x793   : > { %v1971_v44 = vunpack.c.l.bf16 %v1967_v36 }
 0x794   : > { %v1663_v48 = vsel %vm1662_vm4, %v2646_v39, %v1659_v41 }
 0x795   : > { %v1667_v49 = vmul.f32 %v1663_v48, %v1611_v42  ;;  %v2403_v40 = vadd.f32 -1.0, %v1971_v44 }
 0x797   : > { %v1675_v51 = vmul.f32 %v2613_v24, %v1667_v49 }
 0x799   : > { %v3219_v53 = vadd.f32 %v2614_v35, %v1675_v51  ;;  %v1966_v35 = vpack.c.bf16 %v1962_v29, %v1962_v29 }
 0x79b   : > { %v1685_v54 = vpack.c.bf16 %v3219_v53, %v3217_v52  ;;  %v1970_v43 = vunpack.c.l.bf16 %v1966_v35 }
 0x79d   : > { %2382 = vmatmul.msk.bf16.gmra.mxu0 %vm1335_vm6, %v1685_v54  ;;  %v2402_v47 = vadd.f32 -1.0, %v1970_v43  ;;  %v2470_v43 = vld [vmem:[%s3404_s20] sm:$0xff] }
 0x79f   : > { %v1978_v48 = vpack.c.bf16 %v2403_v40, %v2402_v47 }
 0x7a1   : > { %2410 = vmatmul.msk.bf16.vlgmr.msrb.gmra.mxu3 %vm1991_vm8, %v1978_v48 }
 0x80a   : > { %v1721_v57 = vpop.f32.mrf.mxu0 }
 0x80b   : > { %v1722_v59 = vadd.f32 %v2615_v56, %v1721_v57 }
 0x80d   : > { %v1731_v60 = vmul.f32 %v1722_v59, %v1722_v59 }
 0x80f   : > { %v1735_v61 = vmul.f32 %v1731_v60, %v1722_v59 }
 0x811   : > { %v1739_v2 = vmul.f32 0.044715, %v1735_v61  ;;  %v2528_v61 = vld [vmem:[%s3242_s26 + $0x8] sm:$0xff]   ;;  %s3457_s26 = sld [smem:[#allocation24_spill]] }
 0x812   : > { %v1723_v3 = vpop.f32.mrf.mxu0 }
 0x813   : > { %v1743_v4 = vadd.f32 %v1739_v2, %v1722_v59  ;;  %v1724_v5 = vadd.f32 %v2615_v56, %v1723_v3  ;;  %v2510_v2 = vunpack.c.l.bf16 %v2528_v61  ;;  %v2511_v3 = vunpack.c.h.bf16 %v2528_v61 }
 0x815   : > { %v1747_v6 = vmul.f32 0.7978846, %v1743_v4  ;;  %v1732_v7 = vmul.f32 %v1724_v5, %v1724_v5  ;;  %v1964_v4 = vmul.f32 0.007873535, %v2510_v2 }
 0x817   : > { %v1736_v8 = vmul.f32 %v1732_v7, %v1724_v5  ;;  %2647 = vtanh.f32 %v1747_v6  ;;  %v1968_v6 = vpack.c.bf16 %v1964_v4, %v1964_v4 }
 0x819   : > { %v1740_v9 = vmul.f32 0.044715, %v1736_v8  ;;  %v1972_v8 = vunpack.c.l.bf16 %v1968_v6 }
 0x81a   : > { %v1726_v10 = vpop.f32.mrf.mxu0 }
 0x81b   : > { %v1744_v11 = vadd.f32 %v1740_v9, %v1724_v5  ;;  %v1727_v12 = vadd.f32 %v2615_v56, %v1726_v10  ;;  %v2404_v10 = vadd.f32 -1.0, %v1972_v8 }
 0x81d   : > { %v1748_v13 = vmul.f32 0.7978846, %v1744_v11  ;;  %v1733_v14 = vmul.f32 %v1727_v12, %v1727_v12  ;;  %v2648_v18 = vpop.eup %2647 }
 0x81e   : > { %v1755_v63 = vadd.f32 1.0, %v2648_v18 }
 0x81f   : > { %2649 = vtanh.f32 %v1748_v13  ;;  %v1737_v19 = vmul.f32 %v1733_v14, %v1727_v12 }
 0x820   : > { %v1759_v33 = vmul.f32 0.5, %v1755_v63 }
 0x821   : > { %v1741_v24 = vmul.f32 0.044715, %v1737_v19 }
 0x822   : > { %v1728_v28 = vpop.f32.mrf.mxu0  ;;  %v1763_v41 = vmul.f32 %v1759_v33, %v1722_v59  ;;  %v2471_v33 = vld [vmem:[%s3404_s20 + $0x8] sm:$0xff] }
 0x823   : > { %v1745_v16 = vadd.f32 %v1741_v24, %v1727_v12  ;;  %v1729_v0 = vadd.f32 %v2615_v56, %v1728_v28  ;;  %2057 = vmatpush.bf16.msrb.mxu2 %v2471_v33 }
 0x825   : > { %v2650_v37 = vpop.eup %2649  ;;  %v1749_v38 = vmul.f32 0.7978846, %v1745_v16  ;;  %v1734_v39 = vmul.f32 %v1729_v0, %v1729_v0 }
 0x826   : > { %v1756_v21 = vadd.f32 1.0, %v2650_v37 }
 0x827   : > { %v1738_v45 = vmul.f32 %v1734_v39, %v1729_v0  ;;  %2651 = vtanh.f32 %v1749_v38  ;;  %v2011_v39 = vpop.f32.mrf.mxu3  ;;  %2058 = vmatpush.bf16.msrb.mxu2 %v2470_v43 }
 0x828   : > { %v1760_v46 = vmul.f32 0.5, %v1756_v21 }
 0x829   : > { %v1742_v25 = vmul.f32 0.044715, %v1738_v45 }
 0x82a   : > { %v1764_v42 = vmul.f32 %v1760_v46, %v1724_v5  ;;  %v1965_v5 = vmul.f32 0.007873535, %v2511_v3 }
 0x82b   : > { %v1746_v49 = vadd.f32 %v1742_v25, %v1729_v0 }
 0x82c   : > { %v1767_v50 = vpack.c.bf16 %v1764_v42, %v1763_v41  ;;  %v1969_v7 = vpack.c.bf16 %v1965_v5, %v1965_v5 }
 0x82d   : > { %v1750_v51 = vmul.f32 0.7978846, %v1746_v49  ;;  %v2652_v54 = vpop.eup %2651 }
 0x82e   : > { %2399 = vmatmul.msk.bf16.vlgmr.msra.gmra.mxu1 %vm1404_vm7, %v1767_v50  ;;  %v1757_v26 = vadd.f32 1.0, %v2652_v54  ;;  %v1973_v9 = vunpack.c.l.bf16 %v1969_v7  ;;  %v2469_v54 = vld [vmem:[%s3403_s19 + $0x8] sm:$0xff] }
 0x82f   : > { %2653 = vtanh.f32 %v1750_v51  ;;  %v2013_v21 = vpop.f32.mrf.mxu3  ;;  %2094 = vmatpush.bf16.msra.mxu0 %v2469_v54 }
 0x830   : > { %v1761_v56 = vmul.f32 0.5, %v1757_v26  ;;  %v2405_v11 = vadd.f32 -1.0, %v1973_v9 }
 0x832   : > { %v1765_v58 = vmul.f32 %v1761_v56, %v1727_v12  ;;  %v1979_v13 = vpack.c.bf16 %v2405_v11, %v2404_v10  ;;  %v2616_v12 = vld [vmem:[%s3400_s16] ss:$0 sm:$0xff] }
 0x833   : > { %v2468_v56 = vld [vmem:[%s3403_s19] sm:$0xff] }
 0x834   : > { %2411 = vmatmul.msk.bf16.gmra.mxu3 %vm1991_vm8, %v1979_v13  ;;  %2095 = vmatpush.bf16.msra.mxu0 %v2468_v56 }
 0x835   : > { %v2654_v30 = vpop.eup %2653 }
 0x836   : > { %v1758_v55 = vadd.f32 1.0, %v2654_v30 }
 0x838   : > { %v1762_v57 = vmul.f32 0.5, %v1758_v55 }
 0x83a   : > { %v1766_v60 = vmul.f32 %v1762_v57, %v1729_v0 }
 0x83c   : > { %v1768_v59 = vpack.c.bf16 %v1766_v60, %v1765_v58 }
 0x83e   : > { %2400 = vmatmul.msk.bf16.gmra.mxu1 %vm1404_vm7, %v1768_v59 }
 0x8ab   : > { %v1816_v14 = vpop.f32.mrf.mxu1 }
 0x8ac   : > { %v1826_v15 = vadd.f32 %v1816_v14, %v3207_v31 }
 0x8ae   : > { %v3260_v17 = vadd.f32 %v2616_v12, %v1826_v15 }
 0x8b0   : > { %v1838_v18 = vsel %vm1335_vm6, %v3260_v17, 0.0  ;;  %v1854_v19 = vmul.f32 %v3260_v17, %v3260_v17 }
 0x8b1   : > { %1839 = vadd.xlane.f32.xlu1 %v1838_v18 }
 0x8b2   : > { %v1858_v20 = vsel %vm1335_vm6, %v1854_v19, 0.0 }
 0x8b3   : > { %1859 = vadd.xlane.f32.xlu0 %v1858_v20  ;;  %v1818_v22 = vpop.f32.mrf.mxu1 }
 0x8b4   : > { %v1827_v62 = vadd.f32 %v1818_v22, %v3209_v32 }
 0x8b6   : > { %v3268_v23 = vadd.f32 %v2616_v12, %v1827_v62 }
 0x8b7   : > { %v2016_v47 = vpop.f32.mrf.mxu3 }
 0x8b8   : > { %v1841_v31 = vsel %vm1335_vm6, %v3268_v23, 0.0  ;;  %v1855_v24 = vmul.f32 %v3268_v23, %v3268_v23 }
 0x8b9   : > { %1842 = vadd.xlane.f32.xlu2 %v1841_v31 }
 0x8ba   : > { %v1861_v27 = vsel %vm1335_vm6, %v1855_v24, 0.0 }
 0x8bb   : > { %1862 = vadd.xlane.f32.xlu1 %v1861_v27  ;;  %v1821_v63 = vpop.f32.mrf.mxu1 }
 0x8bc   : > { %v1828_v28 = vadd.f32 %v1821_v63, %v3217_v52 }
 0x8be   : > { %v3276_v29 = vadd.f32 %v2616_v12, %v1828_v28 }
 0x8bf   : > { %v2018_v41 = vpop.f32.mrf.mxu3 }
 0x8c0   : > { %v1844_v32 = vsel %vm1335_vm6, %v3276_v29, 0.0  ;;  %v1856_v34 = vmul.f32 %v3276_v29, %v3276_v29 }
 0x8c1   : > { %1845 = vadd.xlane.f32.xlu2 %v1844_v32 }
 0x8c2   : > { %v1864_v16 = vsel %vm1335_vm6, %v1856_v34, 0.0 }
 0x8c3   : > { %1865 = vadd.xlane.f32.xlu1 %v1864_v16  ;;  %v1823_v0 = vpop.f32.mrf.mxu1 }
 0x8c4   : > { %v1829_v35 = vadd.f32 %v1823_v0, %v3219_v53  ;;  %v2618_v53 = vld [vmem:[%s3457_s26] ss:$0 sm:$0xff]  ;;  %s2137_s26 = scalar_lea.hbm %s3460_s2, %s2435_s29 }
 0x8c5   : > { %v2012_v44 = vadd.f32 %v2618_v53, %v2011_v39  ;;  %v2014_v45 = vadd.f32 %v2618_v53, %v2013_v21  ;;  %v2017_v48 = vadd.f32 %v2618_v53, %v2016_v47  ;;  %v2019_v49 = vadd.f32 %v2618_v53, %v2018_v41  ;;  %s2140_s5 = sshll.u32 %s2137_s26, 4  ;;  %s2141_s5 = int_to_ptr.hbm [resolvable:$true] %s2140_s5 }
 0x8c6   : > { %v3284_v36 = vadd.f32 %v2616_v12, %v1829_v35  ;;  %s2677_s3 = sshra.s32 %s2141_s5, 4  ;;  %s2678_s3 = int_to_ptr.hbm [resolvable:$true] %s2677_s3 }
 0x8c7   : > { %v2027_v46 = vpack.c.bf16 %v2014_v45, %v2012_v44  ;;  %v2028_v26 = vpack.c.bf16 %v2019_v49, %v2017_v48  ;;  %v2619_v44 = vld [vmem:[%s3402_s18] ss:$0 sm:$0xff]  ;;  %s2679_s28 = scalar_lea.hbm %s2678_s3, 16  ;;  %p2684_p4 = scmp.lt.s32.totalorder %s2678_s3, %s3460_s2 }
 0x8c8   : > { %v1847_v52 = vsel %vm1335_vm6, %v3284_v36, 0.0  ;;  %v1857_v37 = vmul.f32 %v3284_v36, %v3284_v36  ;;  %p2680_p0 = scmp.ne.s32.totalorder %s2678_s3, %s2679_s28  ;;  %p2685_p5 = scmp.lt.s32.totalorder %s2683_s0, %s2679_s28 }
 0x8c9   : > { %1848 = vadd.xlane.f32.xlu0 %v1847_v52  ;;  %2420 = vmatmul.msk.bf16.vlgmr.msrb.gmra.mxu2 %vm1335_vm6, %v2027_v46  ;;  %v2617_v52 = vld [vmem:[%s3401_s17] ss:$0 sm:$0xff] }
 0x8ca   : > { %v1867_v38 = vsel %vm1335_vm6, %v1857_v37, 0.0  ;;  %p2681_p1 = pnand %p2680_p0, %p2929_p3  ;;  %p2686_p6 = por %p2685_p5, %p2684_p4 }
 0x8cb   : > { %1868 = vadd.xlane.f32.xlu2 %v1867_v38 }
 0x8cc   : > { %p2682_p2 = pneg %p2681_p1 }
 0x8ce   : > { %p2687_p7 = pnand %p2686_p6, %p2682_p2 }
 0x8d9   : > { %2421 = vmatmul.msk.bf16.gmra.mxu2 %vm1335_vm6, %v2028_v26 }
 0x924   : > { %v1840_v40 = vpop.xlane.xlu1 %1839 }
 0x925   : > { %v1850_v25 = vmul.f32 %v1840_v40, %v3179_v1 }
 0x926   : > { %v1860_v42 = vpop.xlane.xlu0 %1859 }
 0x927   : > { %v1878_v50 = vmul.f32 %v1850_v25, %v1850_v25  ;;  %v1870_v51 = vmul.f32 %v1860_v42, %v3179_v1  ;;  %v1874_v34 = vsub.f32 %v3260_v17, %v1850_v25 }
 0x929   : > { %v1882_v30 = vsub.f32 %v1870_v51, %v1878_v50 }
 0x92b   : > { %v1886_v55 = vadd.f32 1e-06, %v1882_v30 }
 0x92c   : > { %v1843_v57 = vpop.xlane.xlu2 %1842 }
 0x92d   : > { %2655 = vrsqrt.f32 %v1886_v55  ;;  %v1851_v58 = vmul.f32 %v1843_v57, %v3179_v1  ;;  %vm1896_vm9 = vweird.f32 %v1886_v55 }
 0x92e   : > { %v1863_v60 = vpop.xlane.xlu1 %1862 }
 0x92f   : > { %v1879_v59 = vmul.f32 %v1851_v58, %v1851_v58  ;;  %v1871_v61 = vmul.f32 %v1863_v60, %v3179_v1  ;;  %v1875_v53 = vsub.f32 %v3268_v23, %v1851_v58 }
 0x931   : > { %v1883_v2 = vsub.f32 %v1871_v61, %v1879_v59 }
 0x933   : > { %v2656_v3 = vpop.eup %2655  ;;  %v1887_v4 = vadd.f32 1e-06, %v1883_v2 }
 0x934   : > { %v1891_v5 = vmul.f32 %v2656_v3, %v1886_v55  ;;  %v1846_v6 = vpop.xlane.xlu2 %1845  ;;  %vm1897_vm7 = vweird.f32 %v2656_v3 }
 0x935   : > { %2657 = vrsqrt.f32 %v1887_v4  ;;  %v3313_v7 = vmul.f32 %v1846_v6, %v3179_v1  ;;  %vm1898_vm10 = vmor %vm1896_vm9, %vm1897_vm7  ;;  %vm1906_vm12 = vweird.f32 %v1887_v4 }
 0x936   : > { %v1892_v8 = vmul.f32 %v2656_v3, %v1891_v5  ;;  %v1866_v9 = vpop.xlane.xlu1 %1865 }
 0x937   : > { %v1880_v10 = vmul.f32 %v3313_v7, %v3313_v7  ;;  %v1872_v11 = vmul.f32 %v1866_v9, %v3179_v1  ;;  %v1876_v54 = vsub.f32 %v3276_v29, %v3313_v7 }
 0x938   : > { %v1893_v13 = vmul.f32 0.5, %v1892_v8 }
 0x939   : > { %v1884_v12 = vsub.f32 %v1872_v11, %v1880_v10 }
 0x93a   : > { %v1894_v14 = vsub.f32 1.5, %v1893_v13 }
 0x93b   : > { %v2658_v15 = vpop.eup %2657  ;;  %v1888_v18 = vadd.f32 1e-06, %v1884_v12 }
 0x93c   : > { %v1895_v19 = vmul.f32 %v2656_v3, %v1894_v14  ;;  %v1901_v20 = vmul.f32 %v2658_v15, %v1887_v4  ;;  %v1849_v22 = vpop.xlane.xlu0 %1848  ;;  %vm1907_vm11 = vweird.f32 %v2658_v15 }
 0x93d   : > { %2659 = vrsqrt.f32 %v1888_v18  ;;  %v1853_v62 = vmul.f32 %v1849_v22, %v3179_v1  ;;  %vm1908_vm13 = vmor %vm1906_vm12, %vm1907_vm11  ;;  %vm1916_vm15 = vweird.f32 %v1888_v18 }
 0x93e   : > { %v1902_v31 = vmul.f32 %v2658_v15, %v1901_v20  ;;  %v1869_v24 = vpop.xlane.xlu2 %1868  ;;  %v1899_v28 = vsel %vm1898_vm10, %v2656_v3, %v1895_v19 }
 0x93f   : > { %v1881_v27 = vmul.f32 %v1853_v62, %v1853_v62  ;;  %v1873_v63 = vmul.f32 %v1869_v24, %v3179_v1  ;;  %v1930_v37 = vmul.f32 %v1899_v28, %v1874_v34  ;;  %v1877_v56 = vsub.f32 %v3284_v36, %v1853_v62  ;;  %v2620_v36 = vld [vmem:[%s3458_s22] ss:$0 sm:$0xff]  ;;  %s2138_s22 = sshll.u32 %s2964_s6, 4  ;;  %s2139_s22 = int_to_ptr.vmem [resolvable:$true] %s2138_s22 }
 0x940   : > { %v1903_v32 = vmul.f32 0.5, %v1902_v31 }
 0x941   : > { %v1885_v16 = vsub.f32 %v1873_v63, %v1881_v27  ;;  %v1938_v17 = vmul.f32 %v2617_v52, %v1930_v37 }
 0x942   : > { %v1904_v0 = vsub.f32 1.5, %v1903_v32 }
 0x943   : > { %v2660_v35 = vpop.eup %2659  ;;  %v1889_v38 = vadd.f32 1e-06, %v1885_v16  ;;  %v1946_v25 = vadd.f32 %v2619_v44, %v1938_v17 }
 0x944   : > { %v1905_v39 = vmul.f32 %v2658_v15, %v1904_v0  ;;  %v1911_v33 = vmul.f32 %v2660_v35, %v1888_v18  ;;  %vm1917_vm14 = vweird.f32 %v2660_v35 }
 0x945   : > { %2661 = vrsqrt.f32 %v1889_v38  ;;  %vm1918_vm0 = vmor %vm1916_vm15, %vm1917_vm14  ;;  %vm1926_vm2 = vweird.f32 %v1889_v38 }
 0x946   : > { %v1909_v1 = vsel %vm1908_vm13, %v2658_v15, %v1905_v39  ;;  %v1912_v21 = vmul.f32 %v2660_v35, %v1911_v33 }
 0x947   : > { %v1931_v43 = vmul.f32 %v1909_v1, %v1875_v53 }
 0x948   : > { %v1913_v45 = vmul.f32 0.5, %v1912_v21 }
 0x949   : > { %v1939_v46 = vmul.f32 %v2617_v52, %v1931_v43 }
 0x94a   : > { %v1914_v47 = vsub.f32 1.5, %v1913_v45 }
 0x94b   : > { %v2662_v40 = vpop.eup %2661  ;;  %v1947_v41 = vadd.f32 %v2619_v44, %v1939_v46 }
 0x94c   : > { %v1915_v42 = vmul.f32 %v2660_v35, %v1914_v47  ;;  %v1921_v48 = vmul.f32 %v2662_v40, %v1889_v38  ;;  %vm1927_vm1 = vweird.f32 %v2662_v40  ;;  %v2060_v29 = vpop.f32.mrf.mxu2 }
 0x94d   : > { %v2021_v23 = vpack.c.bf16 %v1947_v41, %v1946_v25  ;;  %vm1928_vm3 = vmor %vm1926_vm2, %vm1927_vm1 }
 0x94e   : > { %v1922_v49 = vmul.f32 %v2662_v40, %v1921_v48  ;;  %v1919_v50 = vsel %vm1918_vm0, %v2660_v35, %v1915_v42 }
 0x94f   : > { %2430 = vmatmul.msk.bf16.vlgmr.msra.gmra.mxu0 %vm1335_vm6, %v2021_v23  ;;  %v1932_v30 = vmul.f32 %v1919_v50, %v1876_v54 }
 0x950   : > { %v1923_v51 = vmul.f32 0.5, %v1922_v49 }
 0x951   : > { %v1940_v60 = vmul.f32 %v2617_v52, %v1932_v30 }
 0x952   : > { %v1924_v26 = vsub.f32 1.5, %v1923_v51 }
 0x953   : > { %v1948_v61 = vadd.f32 %v2619_v44, %v1940_v60 }
 0x954   : > { %v1925_v55 = vmul.f32 %v2662_v40, %v1924_v26  ;;  %v2062_v5 = vpop.f32.mrf.mxu2 }
 0x956   : > { %v1929_v57 = vsel %vm1928_vm3, %v2662_v40, %v1925_v55 }
 0x957   : > { %v1933_v58 = vmul.f32 %v1929_v57, %v1877_v56 }
 0x959   : > { %v1941_v59 = vmul.f32 %v2617_v52, %v1933_v58 }
 0x95b   : > { %v1949_v2 = vadd.f32 %v2619_v44, %v1941_v59 }
 0x95c   : > { %v2065_v13 = vpop.f32.mrf.mxu2 }
 0x95d   : > { %v2022_v3 = vpack.c.bf16 %v1949_v2, %v1948_v61 }
 0x95f   : > { %2431 = vmatmul.msk.bf16.gmra.mxu0 %vm1335_vm6, %v2022_v3 }
 0x964   : > { %v2067_v15 = vpop.f32.mrf.mxu2 }
 0x9cc   : > { %v2097_v4 = vpop.f32.mrf.mxu0 }
 0x9cd   : > { %v2098_v6 = vadd.f32 %v2097_v4, %v2060_v29 }
 0x9cf   : > { %v2111_v9 = vadd.f32 %v2620_v36, %v2098_v6 }
 0x9d4   : > { %v2099_v7 = vpop.f32.mrf.mxu0 }
 0x9d5   : > { %v2100_v8 = vadd.f32 %v2099_v7, %v2062_v5 }
 0x9d7   : > { %v2112_v10 = vadd.f32 %v2620_v36, %v2100_v8 }
 0x9d9   : > { %v2515_v11 = vpack.c.bf16 %v2112_v10, %v2111_v9 }
 0x9db   : > { %2516 = vst [vmem:[%s2964_s6] sm:$0xff] %v2515_v11  }
 0x9dc   : > { %v2102_v12 = vpop.f32.mrf.mxu0 }
 0x9dd   : > { %v2103_v14 = vadd.f32 %v2102_v12, %v2065_v13 }
 0x9df   : > { %v2113_v20 = vadd.f32 %v2620_v36, %v2103_v14 }
 0x9e4   : > { %v2104_v18 = vpop.f32.mrf.mxu0 }
 0x9e5   : > { %v2105_v19 = vadd.f32 %v2104_v18, %v2067_v15 }
 0x9e7   : > { %v2114_v22 = vadd.f32 %v2620_v36, %v2105_v19 }
 0x9e9   : > { %v2520_v62 = vpack.c.bf16 %v2114_v22, %v2113_v20 }
 0x9eb   : > { %2529 = vst [vmem:[%s2964_s6 + $0x8] sm:$0xff] %v2520_v62  }
 0x9ec   : > { %2690 = shalt.err (!%p2687_p7)
}
 0x9ed   : > { %s2761_s6 = smov 64   ;;  %s2762_s23 = smov 4  }
 0x9ee   : > { %2534 = dma.vmem_to_hbm [thread:$0]  (%p2929_p3), %s2139_s22, 256, %s2141_s5, %s2124_s4, %s2761_s6, %s2761_s6, %s2762_s23  }
 0x9ef PF: > { %s3463_s30 = sld [smem:[#allocation13_spill]] }
 0x9f0   : > { %s3464_s7 = sld [smem:[#allocation8_spill]] }
 0x9f5   : > { %p2540_p9 = scmp.ge.s32.totalorder %s3463_s30, 2 }
 0x9f6   : > { %s2155_s1 = sand.u32 1, %s3464_s7  }
 0x9f7   : > { %p2537_p10 = pnand %p2540_p9, %p2938_p8  ;;  %s2156_s29 = scalar_lea.sflag [#allocation6], %s2155_s1 }
 0x9f9   : > { %p2538_p11 = pneg %p2537_p10 }
 0x9fb   : > { %2724 = dma.done.wait (%p2538_p11), %s2156_s29, 256  }
 0x9fc   : > { %2726 = vsyncadd (%p2538_p11), %s2156_s29, 4294967040  ;;  %s35_s1 = sadd.s32 1, %s3463_s30   ;;  %s3466_s3 = sld [smem:[#allocation9_spill]] }
 0x9fd   : > { %p32_p12 = scmp.ge.s32.totalorder %s35_s1, 6   ;;  %s3467_s28 = sld [smem:[#allocation10_spill]] }
 0x9fe   : > { %s3468_s29 = sld [smem:[#allocation18_spill]] }
 0x9ff   : > { %s3469_s30 = sld [smem:[#allocation11_spill]]  ;;  %34 = sbr.rel (!%p32_p12) target bundleno = 17 (0x11), region = 152 }
 0xa00   : > { %s3470_s4 = sld [smem:[#allocation12_spill]] }
 0xa01   : > { %s3471_s0 = sld [smem:[#allocation14_spill]] }
 0xa02   : > { %s3472_s23 = sld [smem:[#allocation16_spill]] }
 0xa04   :  { %2162 = vsyncpa [#allocation6], 1 }
 0xa05   :  { %2164 = vsyncpa [#allocation6 + $0x1], 1 }

</bundles_post_ra>
